<compile_context>
chip_gen: v7x
topology: tpu7x:2x2x1
jax: 0.10.0
libtpu: 0.0.40
codegen_flags: <defaults>
</compile_context>

<pallas_src>
import functools

import jax
import jax.numpy as jnp
from jax.experimental import pallas as pl
from jax.experimental.pallas import tpu as pltpu


def _src_loss_kernel(qf_ref, kf_ref, out_ref, *, tm, n_valid):
    """One row-tile of the SRC (JSD) loss.

    qf_ref / kf_ref : [Np, D] L2-normalized feat_q / feat_k (resident full block)
    out_ref         : [tm, 1] per-row partial loss for this row tile
    """
    n_pad = qf_ref.shape[0]
    i = pl.program_id(0)
    row0 = pl.multiple_of(i * tm, tm)

    # Row tiles are sliced from the resident full blocks (no extra inputs/DMAs).
    qt = qf_ref[pl.ds(row0, tm), :]
    kt = kf_ref[pl.ds(row0, tm), :]
    qf = qf_ref[...]
    kf = kf_ref[...]

    # s[r, c] = <x_tile_r, x_full_c>  -> [tm, Np] Gram slab on the MXU.
    dn = (((1,), (1,)), ((), ()))
    sq = jax.lax.dot_general(qt, qf, dn, preferred_element_type=jnp.float32)
    sk = jax.lax.dot_general(kt, kf, dn, preferred_element_type=jnp.float32)

    padded = n_pad != n_valid
    if padded:
        col = jax.lax.broadcasted_iota(jnp.int32, (tm, n_pad), 1)
        col_valid = col < n_valid
        neg = jnp.float32(-1e30)            # exp() underflows to exactly 0
        sq = jnp.where(col_valid, sq, neg)
        sk = jnp.where(col_valid, sk, neg)

    # Row-wise log-softmax: 1 exp / element; per-row log + divide are negligible.
    def softmax_and_log(s):
        mx = jnp.max(s, axis=-1, keepdims=True)
        z = s - mx
        e = jnp.exp(z)
        denom = jnp.sum(e, axis=-1, keepdims=True)
        return e / denom, z - jnp.log(denom)

    p1, lp1 = softmax_and_log(sq)
    p2, lp2 = softmax_and_log(sk)

    # JSD element: 0.5*(p1*lp1 + p2*lp2) - m*log(m); only fresh transcendental
    # per element is log(m).
    elem = 0.5 * (p1 * lp1 + p2 * lp2)
    m = 0.5 * (p1 + p2)
    elem = elem - m * jnp.log(m)

    if padded:
        elem = jnp.where(col_valid, elem, 0.0)      # kill 0*log(0) lanes
        rowsum = jnp.sum(elem, axis=-1, keepdims=True)
        row = jax.lax.broadcasted_iota(jnp.int32, (tm, 1), 0) + i * tm
        out_ref[...] = jnp.where(row < n_valid, rowsum, 0.0)
    else:
        out_ref[...] = jnp.sum(elem, axis=-1, keepdims=True)


def _vmem_config():
    """Generation-aware VMEM budgets: 128 MiB parts (v5e/v6e) vs 64 MiB (v7x)."""
    try:
        phys = pltpu.get_tpu_info().vmem_capacity_bytes
    except Exception:                       # conservative default if query fails
        phys = 64 * 1024 * 1024
    if phys >= 100 * 1024 * 1024:           # v5e / v6e: 128 MiB VMEM
        return 512, 64 * 1024 * 1024, 100 * 1024 * 1024
    return 256, 20 * 1024 * 1024, 40 * 1024 * 1024  # v7x: 64 MiB VMEM


def _pick_row_tile(n_pad, d, max_tile, vmem_budget_bytes):
    """Largest multiple-of-8 divisor of n_pad whose live slabs fit the budget.

    Prefers a grid of >= 2 (even) steps so both v7x TensorCores get work.
    Never falls back to a full-size block: n_pad is a multiple of 8, so tm = 8
    is always a legal choice.
    """
    cands = [t for t in (512, 256, 128, 64, 32, 16, 8)
             if t <= max_tile and t <= n_pad and n_pad % t == 0]
    if not cands:                            # n_pad < 8 never happens (wrapper pads)
        return n_pad

    def est_bytes(t):
        # ~8 live [t, n_pad] f32 slabs + double-buffered [n_pad, d] f32 constant
        # input blocks (counted conservatively) + double-buffered output tiles.
        return 8 * t * n_pad * 4 + 2 * 2 * n_pad * d * 4 + 2 * t * 4

    fitting = [t for t in cands if est_bytes(t) <= vmem_budget_bytes] or [cands[-1]]
    for t in fitting:                        # largest first, even grid >= 2
        g = n_pad // t
        if g >= 2 and g % 2 == 0:
            return t
    for t in fitting:                        # largest first, grid >= 2
        if n_pad // t >= 2:
            return t
    return fitting[0]


@functools.partial(jax.jit, static_argnames=("use_bf16_matmul",))
def src_loss(feat_q, feat_k, *, use_bf16_matmul=False):
    """Pallas SRC_Loss.forward: returns (loss_src, 0.0)."""
    n, d = feat_q.shape
    eps = jnp.float32(1e-7)

    def l2_normalize(x):
        # matches torch Normalize(2): x / (sqrt(sum(x^2, dim=1, keepdim=True)) + 1e-7)
        x = x.astype(jnp.float32)
        return x / (jnp.sqrt(jnp.sum(x * x, axis=1, keepdims=True)) + eps)

    # Hoisted normalization: done once here, not once per grid step.
    qn = l2_normalize(feat_q)
    kn = l2_normalize(feat_k)
    if use_bf16_matmul:   # optional (mainly v5e): bf16 MXU operands, f32 accumulation
        qn = qn.astype(jnp.bfloat16)
        kn = kn.astype(jnp.bfloat16)

    # Pad rows up to a multiple of 8; padded rows/cols are masked in-kernel.
    n_pad = max(8, -(-n // 8) * 8)
    if n_pad != n:
        qn = jnp.pad(qn, ((0, n_pad - n), (0, 0)))
        kn = jnp.pad(kn, ((0, n_pad - n), (0, 0)))

    max_tile, vmem_budget, vmem_limit = _vmem_config()
    tm = _pick_row_tile(n_pad, d, max_tile, vmem_budget)
    grid = (n_pad // tm,)

    kernel = functools.partial(_src_loss_kernel, tm=tm, n_valid=n)
    row_loss = pl.pallas_call(
        kernel,
        out_shape=jax.ShapeDtypeStruct((n_pad, 1), jnp.float32),
        grid=grid,
        in_specs=[
            pl.BlockSpec((n_pad, d), lambda i: (0, 0)),   # normalized q (resident)
            pl.BlockSpec((n_pad, d), lambda i: (0, 0)),   # normalized k (resident)
        ],
        out_specs=pl.BlockSpec((tm, 1), lambda i: (i, 0)),
        compiler_params=pltpu.CompilerParams(
            dimension_semantics=("parallel",),   # independent row tiles -> 2 TCs on v7x
            vmem_limit_bytes=vmem_limit,
        ),
        cost_estimate=pl.CostEstimate(
            flops=4 * n_pad * n_pad * d + 12 * n_pad * n_pad,
            transcendentals=3 * n_pad * n_pad,
            bytes_accessed=2 * n_pad * d * 4 + n_pad * 4,
        ),
    )(qn, kn)

    loss = jnp.sum(row_loss)   # padded rows contribute exactly 0
    return loss, 0.0


def _src_loss_ref(feat_q, feat_k):
    """Pure-JAX reference of the PyTorch forward (axis-0 softmax, KLDiv form)."""
    q = feat_q.astype(jnp.float32)
    k = feat_k.astype(jnp.float32)
    qn = q / (jnp.sqrt(jnp.sum(q * q, axis=1, keepdims=True)) + 1e-7)
    kn = k / (jnp.sqrt(jnp.sum(k * k, axis=1, keepdims=True)) + 1e-7)
    sq = qn @ qn.T
    sk = kn @ kn.T
    p1 = jax.nn.softmax(sq, axis=0)
    p2 = jax.nn.softmax(sk, axis=0)
    m = 0.5 * (p1 + p2)
    kl1 = jnp.sum(p1 * (jnp.log(p1) - jnp.log(m)))
    kl2 = jnp.sum(p2 * (jnp.log(p2) - jnp.log(m)))
    return 0.5 * (kl1 + kl2)


if __name__ == "__main__":
    key = jax.random.PRNGKey(0)
    kq, kk = jax.random.split(key)

    # Small shapes consistent with the module: N feature vectors of dim D.
    N, D = 256, 32
    feat_q = jax.random.normal(kq, (N, D), dtype=jnp.float32)
    feat_k = jax.random.normal(kk, (N, D), dtype=jnp.float32)

    loss, zero = src_loss(feat_q, feat_k)
    loss = jax.block_until_ready(loss)
    ref = jax.block_until_ready(_src_loss_ref(feat_q, feat_k))
    assert jnp.allclose(loss, ref, rtol=1e-4, atol=1e-5), (float(loss), float(ref))
    assert float(zero) == 0.0

    # Non-multiple-of-8 N exercises the padded / masked kernel path.
    N2 = 252
    loss2, _ = src_loss(feat_q[:N2], feat_k[:N2])
    loss2 = jax.block_until_ready(loss2)
    ref2 = jax.block_until_ready(_src_loss_ref(feat_q[:N2], feat_k[:N2]))
    assert jnp.allclose(loss2, ref2, rtol=1e-4, atol=1e-5), (float(loss2), float(ref2))

    print("KERNEL_OK")
</pallas_src>

<mosaic_0001>
module attributes {stable_mosaic.version = 11 : i64} {
  func.func @_src_loss_kernel(%arg0: i32, %arg1: memref<256x32xf32, #tpu.memory_space<vmem>>, %arg2: memref<256x32xf32, #tpu.memory_space<vmem>>, %arg3: memref<128x1xf32, #tpu.memory_space<vmem>>) attributes {dimension_semantics = [#tpu.dimension_semantics<parallel>], iteration_bounds = array<i64: 2>, scalar_prefetch = 0 : i64, scratch_operands = 0 : i64, tpu.core_type = #tpu.core_type<tc>, window_params = [{pipeline_mode = #tpu.pipeline_mode<synchronous>, transform_indices = @transform_0, window_bounds = array<i64: 256, 32>}, {pipeline_mode = #tpu.pipeline_mode<synchronous>, transform_indices = @transform_1, window_bounds = array<i64: 256, 32>}, {transform_indices = @transform_2, window_bounds = array<i64: 128, 1>}]} {
    %c128_i32 = arith.constant 128 : i32
    %0 = arith.muli %arg0, %c128_i32 : i32
    %1 = tpu.assume_multiple %0, 128 : i32
    %2 = arith.index_cast %1 : i32 to index
    %c0 = arith.constant 0 : index
    %3 = vector.load %arg1[%2, %c0] : memref<256x32xf32, #tpu.memory_space<vmem>>, vector<128x32xf32>
    %4 = arith.index_cast %1 : i32 to index
    %c0_0 = arith.constant 0 : index
    %5 = vector.load %arg2[%4, %c0_0] : memref<256x32xf32, #tpu.memory_space<vmem>>, vector<128x32xf32>
    %c0_1 = arith.constant 0 : index
    %c0_2 = arith.constant 0 : index
    %6 = vector.load %arg1[%c0_1, %c0_2] : memref<256x32xf32, #tpu.memory_space<vmem>>, vector<256x32xf32>
    %c0_3 = arith.constant 0 : index
    %c0_4 = arith.constant 0 : index
    %7 = vector.load %arg2[%c0_3, %c0_4] : memref<256x32xf32, #tpu.memory_space<vmem>>, vector<256x32xf32>
    %cst = arith.constant dense<0.000000e+00> : vector<128x256xf32>
    %8 = tpu.matmul %3, %6, %cst {dimension_numbers = #tpu.dot_dimension_numbers<[1], [1], [0], [0], [0, 0, 1, 0], [], []>} : vector<128x32xf32>, vector<256x32xf32>, vector<128x256xf32> -> vector<128x256xf32>
    %cst_5 = arith.constant dense<0.000000e+00> : vector<128x256xf32>
    %9 = tpu.matmul %5, %7, %cst_5 {dimension_numbers = #tpu.dot_dimension_numbers<[1], [1], [0], [0], [0, 0, 1, 0], [], []>} : vector<128x32xf32>, vector<256x32xf32>, vector<128x256xf32> -> vector<128x256xf32>
    %cst_6 = arith.constant dense<0xFF800000> : vector<128xf32>
    %10 = vector.multi_reduction <maximumf>, %8, %cst_6 [1] : vector<128x256xf32> to vector<128xf32>
    %11 = vector.shape_cast %10 : vector<128xf32> to vector<128x1xf32>
    %12 = vector.broadcast %11 : vector<128x1xf32> to vector<128x256xf32>
    %13 = arith.subf %8, %12 : vector<128x256xf32>
    %14 = math.exp %13 : vector<128x256xf32>
    %cst_7 = arith.constant dense<0.000000e+00> : vector<128xf32>
    %15 = vector.multi_reduction <add>, %14, %cst_7 [1] : vector<128x256xf32> to vector<128xf32>
    %16 = vector.shape_cast %15 : vector<128xf32> to vector<128x1xf32>
    %17 = vector.broadcast %16 : vector<128x1xf32> to vector<128x256xf32>
    %18 = arith.divf %14, %17 : vector<128x256xf32>
    %19 = math.log %16 : vector<128x1xf32>
    %20 = vector.broadcast %19 : vector<128x1xf32> to vector<128x256xf32>
    %21 = arith.subf %13, %20 : vector<128x256xf32>
    %cst_8 = arith.constant dense<0xFF800000> : vector<128xf32>
    %22 = vector.multi_reduction <maximumf>, %9, %cst_8 [1] : vector<128x256xf32> to vector<128xf32>
    %23 = vector.shape_cast %22 : vector<128xf32> to vector<128x1xf32>
    %24 = vector.broadcast %23 : vector<128x1xf32> to vector<128x256xf32>
    %25 = arith.subf %9, %24 : vector<128x256xf32>
    %26 = math.exp %25 : vector<128x256xf32>
    %cst_9 = arith.constant dense<0.000000e+00> : vector<128xf32>
    %27 = vector.multi_reduction <add>, %26, %cst_9 [1] : vector<128x256xf32> to vector<128xf32>
    %28 = vector.shape_cast %27 : vector<128xf32> to vector<128x1xf32>
    %29 = vector.broadcast %28 : vector<128x1xf32> to vector<128x256xf32>
    %30 = arith.divf %26, %29 : vector<128x256xf32>
    %31 = math.log %28 : vector<128x1xf32>
    %32 = vector.broadcast %31 : vector<128x1xf32> to vector<128x256xf32>
    %33 = arith.subf %25, %32 : vector<128x256xf32>
    %34 = arith.mulf %18, %21 : vector<128x256xf32>
    %35 = arith.mulf %30, %33 : vector<128x256xf32>
    %36 = arith.addf %34, %35 : vector<128x256xf32>
    %cst_10 = arith.constant 5.000000e-01 : f32
    %37 = vector.broadcast %cst_10 : f32 to vector<128x256xf32>
    %38 = arith.mulf %37, %36 : vector<128x256xf32>
    %39 = arith.addf %18, %30 : vector<128x256xf32>
    %cst_11 = arith.constant 5.000000e-01 : f32
    %40 = vector.broadcast %cst_11 : f32 to vector<128x256xf32>
    %41 = arith.mulf %40, %39 : vector<128x256xf32>
    %42 = math.log %41 : vector<128x256xf32>
    %43 = arith.mulf %41, %42 : vector<128x256xf32>
    %44 = arith.subf %38, %43 : vector<128x256xf32>
    %cst_12 = arith.constant dense<0.000000e+00> : vector<128xf32>
    %45 = vector.multi_reduction <add>, %44, %cst_12 [1] : vector<128x256xf32> to vector<128xf32>
    %46 = vector.shape_cast %45 : vector<128xf32> to vector<128x1xf32>
    %c0_13 = arith.constant 0 : index
    %c0_14 = arith.constant 0 : index
    %47 = vector.load %arg3[%c0_13, %c0_14] : memref<128x1xf32, #tpu.memory_space<vmem>>, vector<128x1xf32>
    tpu.vector_store %arg3[%c0_13, %c0_14], %46 {strides = array<i32>} : memref<128x1xf32, #tpu.memory_space<vmem>>, vector<128x1xf32>,
    return
  }
  func.func @transform_0(%arg0: i32) -> (i32, i32) {
    %c0_i32 = arith.constant 0 : i32
    %c0_i32_0 = arith.constant 0 : i32
    %c0_i32_1 = arith.constant 0 : i32
    return %c0_i32, %c0_i32_0 : i32, i32
  }
  func.func @transform_1(%arg0: i32) -> (i32, i32) {
    %c0_i32 = arith.constant 0 : i32
    %c0_i32_0 = arith.constant 0 : i32
    %c0_i32_1 = arith.constant 0 : i32
    return %c0_i32, %c0_i32_0 : i32, i32
  }
  func.func @transform_2(%arg0: i32) -> (i32, i32) {
    %c0_i32 = arith.constant 0 : i32
    %c0_i32_0 = arith.constant 0 : i32
    return %arg0, %c0_i32 : i32, i32
  }
}

</mosaic_0001>

<bundles_post_ra>
// kernel: src_loss.1
= control target key start
LH: loop header
LB: loop body
LE: loop exit
PB: predicated region body
PF: predicated region fallthrough
CT: control target
= control target key end

     0   :  { %s2556_s9 = smov 0   ;;  %s4265_s0 = inlined_call_operand.vmem [shape: f32[256,32], index: 0, kind: input, shape index: {}]   ;;  %s4266_s1 = inlined_call_operand.vmem [shape: f32[256,32], index: 1, kind: input, shape index: {}]   ;;  %s4267_s2 = inlined_call_operand.vmem [shape: f32[256,1], index: 2, kind: output, shape index: {}]  }
   0x1 LB: > { %s1876_s10 = sadd.s32 4294967295, %s2539_s9   ;;  %p1879_p0 = scmp.ge.s32.totalorder %s2539_s9, 1  ;;  %s2539_s9 = sphi %s2556_s9, %s12_s9  }
   0x2   : > { %p102_p1 = scmp.lt.s32.totalorder %s2539_s9, 3 }
   0x4   : > { %p103_p2 = pnand %p1879_p0, %p102_p1 }
   0x6   : > { %106 = sbr.rel (%p103_p2) target bundleno = 915 (0x393), region = 28 }
   0xd   : > { %v176_v0 = vld [vmem:[%s4265_s0 + $0x80] sm:$0xff]  ;;  %v177_v1 = vld [vmem:[%s4265_s0 + $0x88] sm:$0xff]  ;;  %vm224_vm0 = vcmask 261120   ;;  %v178_v13 = vld [vmem:[%s4265_s0 + $0x90] sm:$0xff]  ;;  %s1882_s15 = sshll.u32 %s1876_s10, 7  ;;  %vm1811_vm2 = vcmask 7168  }
   0xe   : > { %v208_v2 = vld [vmem:[%s4266_s1 + $0x80] sm:$0xff]  ;;  %v2109_v3 = vpack.c.bf16 %v177_v1, %v176_v0  ;;  %vm2575_vm1 = vmpackc.low %vm224_vm0, %vm224_vm0  ;;  %v209_v5 = vld [vmem:[%s4266_s1 + $0x88] sm:$0xff]  ;;  %s2679_s18 = scalar_lea.vmem %s4265_s0, %s1882_s15  ;;  %s2684_s21 = scalar_lea.vmem %s4266_s1, %s1882_s15 }
   0xf   : > { %v160_v6 = vld [vmem:[%s4265_s0] sm:$0xff]  ;;  %v2157_v7 = vpack.c.bf16 %v209_v5, %v208_v2  ;;  %v161_v8 = vld [vmem:[%s4265_s0 + $0x8] sm:$0xff]  ;;  %v179_v14 = vld [vmem:[%s4265_s0 + $0x98] sm:$0xff] }
  0x10   : > { %v192_v9 = vld [vmem:[%s4266_s1] sm:$0xff]  ;;  %v193_v10 = vld [vmem:[%s4266_s1 + $0x8] sm:$0xff]  ;;  %2111 = vmatprep.subr.msk.bf16.mxu0 %vm2575_vm1, %v2109_v3  ;;  %v2112_v11 = vpack.c.bf16 %v161_v8, %v160_v6  ;;  %v210_v15 = vld [vmem:[%s4266_s1 + $0x90] sm:$0xff]  ;;  %v2115_v16 = vpack.c.bf16 %v179_v14, %v178_v13 }
  0x11   : > { %v2160_v12 = vpack.c.bf16 %v193_v10, %v192_v9  ;;  %2159 = vmatprep.subr.msk.bf16.mxu1 %vm2575_vm1, %v2157_v7  ;;  %v211_v17 = vld [vmem:[%s4266_s1 + $0x98] sm:$0xff]  ;;  %v162_v19 = vld [vmem:[%s4265_s0 + $0x10] sm:$0xff]  ;;  %v180_v23 = vld [vmem:[%s4265_s0 + $0xa0] sm:$0xff] }
  0x12   : > { %2114 = vmatpush3.bf16.xpose.msk.msra.mxu0 %vm2575_vm1, %v2112_v11  ;;  %v2163_v18 = vpack.c.bf16 %v211_v17, %v210_v15  ;;  %v163_v20 = vld [vmem:[%s4265_s0 + $0x18] sm:$0xff]  ;;  %v194_v21 = vld [vmem:[%s4266_s1 + $0x10] sm:$0xff]  ;;  %v181_v24 = vld [vmem:[%s4265_s0 + $0xa8] sm:$0xff] }
  0x13   : > { %2162 = vmatpush3.bf16.xpose.msk.msra.mxu1 %vm2575_vm1, %v2160_v12  ;;  %2117 = vmatprep.subr.msk.bf16.mxu0 %vm2575_vm1, %v2115_v16  ;;  %v195_v22 = vld [vmem:[%s4266_s1 + $0x18] sm:$0xff]  ;;  %v212_v25 = vld [vmem:[%s4266_s1 + $0xa0] sm:$0xff]  ;;  %v213_v26 = vld [vmem:[%s4266_s1 + $0xa8] sm:$0xff]  ;;  %v2118_v27 = vpack.c.bf16 %v163_v20, %v162_v19  ;;  %v2121_v29 = vpack.c.bf16 %v181_v24, %v180_v23 }
  0x14   : > { %2165 = vmatprep.subr.msk.bf16.mxu1 %vm2575_vm1, %v2163_v18  ;;  %v2166_v28 = vpack.c.bf16 %v195_v22, %v194_v21  ;;  %v2169_v30 = vpack.c.bf16 %v213_v26, %v212_v25  ;;  %v164_v31 = vld [vmem:[%s4265_s0 + $0x20] sm:$0xff]  ;;  %v165_v32 = vld [vmem:[%s4265_s0 + $0x28] sm:$0xff]  ;;  %v182_v35 = vld [vmem:[%s4265_s0 + $0xb0] sm:$0xff] }
  0x15   : > { %v196_v33 = vld [vmem:[%s4266_s1 + $0x20] sm:$0xff]  ;;  %v197_v34 = vld [vmem:[%s4266_s1 + $0x28] sm:$0xff]  ;;  %v183_v36 = vld [vmem:[%s4265_s0 + $0xb8] sm:$0xff]  ;;  %v2124_v39 = vpack.c.bf16 %v165_v32, %v164_v31 }
  0x16   : > { %v214_v37 = vld [vmem:[%s4266_s1 + $0xb0] sm:$0xff]  ;;  %v215_v38 = vld [vmem:[%s4266_s1 + $0xb8] sm:$0xff]  ;;  %v2172_v40 = vpack.c.bf16 %v197_v34, %v196_v33  ;;  %v2127_v41 = vpack.c.bf16 %v183_v36, %v182_v35  ;;  %v2700_v46 = vld [vmem:[%s2679_s18] sm:$0xff] }
  0x17   : > { %v2175_v42 = vpack.c.bf16 %v215_v38, %v214_v37  ;;  %v166_v43 = vld [vmem:[%s4265_s0 + $0x30] sm:$0xff]  ;;  %v167_v44 = vld [vmem:[%s4265_s0 + $0x38] sm:$0xff]  ;;  %v184_v48 = vld [vmem:[%s4265_s0 + $0xc0] sm:$0xff]  ;;  %2013 = vmatprep.mubr.msk.f32.mxu0 %vm224_vm0, %v2700_v46 }
  0x18   : > { %v198_v45 = vld [vmem:[%s4266_s1 + $0x30] sm:$0xff]  ;;  %v199_v47 = vld [vmem:[%s4266_s1 + $0x38] sm:$0xff]  ;;  %v2713_v49 = vld [vmem:[%s2684_s21] sm:$0xff]  ;;  %v2130_v53 = vpack.c.bf16 %v167_v44, %v166_v43 }
  0x19   : > { %v185_v50 = vld [vmem:[%s4265_s0 + $0xc8] sm:$0xff]  ;;  %v216_v51 = vld [vmem:[%s4266_s1 + $0xc0] sm:$0xff]  ;;  %2077 = vmatprep.mubr.msk.f32.mxu1 %vm224_vm0, %v2713_v49  ;;  %v2178_v54 = vpack.c.bf16 %v199_v47, %v198_v45  ;;  %v186_v61 = vld [vmem:[%s4265_s0 + $0xd0] sm:$0xff] }
  0x1a   : > { %2120 = vmatpush3.bf16.xpose.msk.msra.mxu0 %vm2575_vm1, %v2118_v27  ;;  %v217_v52 = vld [vmem:[%s4266_s1 + $0xc8] sm:$0xff]  ;;  %v2133_v55 = vpack.c.bf16 %v185_v50, %v184_v48  ;;  %v168_v57 = vld [vmem:[%s4265_s0 + $0x40] sm:$0xff]  ;;  %v187_v62 = vld [vmem:[%s4265_s0 + $0xd8] sm:$0xff] }
  0x1b   : > { %2168 = vmatpush3.bf16.xpose.msk.msra.mxu1 %vm2575_vm1, %v2166_v28  ;;  %2123 = vmatprep.subr.msk.bf16.mxu0 %vm2575_vm1, %v2121_v29  ;;  %v2181_v56 = vpack.c.bf16 %v217_v52, %v216_v51  ;;  %v169_v58 = vld [vmem:[%s4265_s0 + $0x48] sm:$0xff]  ;;  %v200_v59 = vld [vmem:[%s4266_s1 + $0x40] sm:$0xff]  ;;  %v218_v63 = vld [vmem:[%s4266_s1 + $0xd0] sm:$0xff]  ;;  %v2139_v3 = vpack.c.bf16 %v187_v62, %v186_v61 }
  0x1c   : > { %2171 = vmatprep.subr.msk.bf16.mxu1 %vm2575_vm1, %v2169_v30  ;;  %v201_v60 = vld [vmem:[%s4266_s1 + $0x48] sm:$0xff]  ;;  %v219_v0 = vld [vmem:[%s4266_s1 + $0xd8] sm:$0xff]  ;;  %v2136_v1 = vpack.c.bf16 %v169_v58, %v168_v57  ;;  %v170_v6 = vld [vmem:[%s4265_s0 + $0x50] sm:$0xff] }
  0x1d   : > { %v2184_v2 = vpack.c.bf16 %v201_v60, %v200_v59  ;;  %v2187_v5 = vpack.c.bf16 %v219_v0, %v218_v63  ;;  %v171_v7 = vld [vmem:[%s4265_s0 + $0x58] sm:$0xff]  ;;  %v202_v8 = vld [vmem:[%s4266_s1 + $0x50] sm:$0xff]  ;;  %v188_v10 = vld [vmem:[%s4265_s0 + $0xe0] sm:$0xff] }
  0x1e   : > { %v203_v9 = vld [vmem:[%s4266_s1 + $0x58] sm:$0xff]  ;;  %v189_v11 = vld [vmem:[%s4265_s0 + $0xe8] sm:$0xff]  ;;  %v220_v12 = vld [vmem:[%s4266_s1 + $0xe0] sm:$0xff]  ;;  %v2142_v14 = vpack.c.bf16 %v171_v7, %v170_v6 }
  0x1f   : > { %v221_v13 = vld [vmem:[%s4266_s1 + $0xe8] sm:$0xff]  ;;  %v2190_v15 = vpack.c.bf16 %v203_v9, %v202_v8  ;;  %v2145_v16 = vpack.c.bf16 %v189_v11, %v188_v10  ;;  %v172_v18 = vld [vmem:[%s4265_s0 + $0x60] sm:$0xff]  ;;  %v190_v22 = vld [vmem:[%s4265_s0 + $0xf0] sm:$0xff] }
  0x20   : > { %v2193_v17 = vpack.c.bf16 %v221_v13, %v220_v12  ;;  %v173_v19 = vld [vmem:[%s4265_s0 + $0x68] sm:$0xff]  ;;  %v204_v20 = vld [vmem:[%s4266_s1 + $0x60] sm:$0xff]  ;;  %v191_v23 = vld [vmem:[%s4265_s0 + $0xf8] sm:$0xff] }
  0x21   : > { %v205_v21 = vld [vmem:[%s4266_s1 + $0x68] sm:$0xff]  ;;  %v222_v24 = vld [vmem:[%s4266_s1 + $0xf0] sm:$0xff]  ;;  %v223_v25 = vld [vmem:[%s4266_s1 + $0xf8] sm:$0xff]  ;;  %v2148_v26 = vpack.c.bf16 %v173_v19, %v172_v18  ;;  %v2151_v28 = vpack.c.bf16 %v191_v23, %v190_v22 }
  0x22   : > { %2126 = vmatpush3.bf16.xpose.msk.msra.mxu0 %vm2575_vm1, %v2124_v39  ;;  %v2196_v27 = vpack.c.bf16 %v205_v21, %v204_v20  ;;  %v2199_v29 = vpack.c.bf16 %v223_v25, %v222_v24  ;;  %v174_v30 = vld [vmem:[%s4265_s0 + $0x70] sm:$0xff]  ;;  %v175_v31 = vld [vmem:[%s4265_s0 + $0x78] sm:$0xff]  ;;  %v128_v36 = vld [vmem:[%s2679_s18 + $0x8] sm:$0xff] }
  0x23   : > { %2174 = vmatpush3.bf16.xpose.msk.msra.mxu1 %vm2575_vm1, %v2172_v40  ;;  %2129 = vmatprep.subr.msk.bf16.mxu0 %vm2575_vm1, %v2127_v41  ;;  %v206_v32 = vld [vmem:[%s4266_s1 + $0x70] sm:$0xff]  ;;  %v207_v33 = vld [vmem:[%s4266_s1 + $0x78] sm:$0xff]  ;;  %v2154_v34 = vpack.c.bf16 %v175_v31, %v174_v30  ;;  %v145_v37 = vld [vmem:[%s2684_s21 + $0x8] sm:$0xff] }
  0x24   : > { %2177 = vmatprep.subr.msk.bf16.mxu1 %vm2575_vm1, %v2175_v42  ;;  %v2202_v35 = vpack.c.bf16 %v207_v33, %v206_v32  ;;  %v129_v38 = vld [vmem:[%s2679_s18 + $0x10] sm:$0xff]  ;;  %v130_v4 = vld [vmem:[%s2679_s18 + $0x18] sm:$0xff]  ;;  %v131_v41 = vld [vmem:[%s2679_s18 + $0x20] sm:$0xff] }
  0x25   : > { %v146_v39 = vld [vmem:[%s2684_s21 + $0x10] sm:$0xff]  ;;  %v147_v40 = vld [vmem:[%s2684_s21 + $0x18] sm:$0xff]  ;;  %v148_v42 = vld [vmem:[%s2684_s21 + $0x20] sm:$0xff] }
  0x26   : > { %v132_v43 = vld [vmem:[%s2679_s18 + $0x28] sm:$0xff]  ;;  %v133_v45 = vld [vmem:[%s2679_s18 + $0x30] sm:$0xff]  ;;  %v134_v47 = vld [vmem:[%s2679_s18 + $0x38] sm:$0xff] }
  0x27   : > { %v149_v44 = vld [vmem:[%s2684_s21 + $0x28] sm:$0xff]  ;;  %v151_v48 = vld [vmem:[%s2684_s21 + $0x38] sm:$0xff]  ;;  %v152_v50 = vld [vmem:[%s2684_s21 + $0x40] sm:$0xff] }
  0x28   : > { %v136_v51 = vld [vmem:[%s2679_s18 + $0x48] sm:$0xff]  ;;  %v139_v57 = vld [vmem:[%s2679_s18 + $0x60] sm:$0xff]  ;;  %v141_v61 = vld [vmem:[%s2679_s18 + $0x70] sm:$0xff] }
  0x29   : > { %v153_v52 = vld [vmem:[%s2684_s21 + $0x48] sm:$0xff]  ;;  %v156_v58 = vld [vmem:[%s2684_s21 + $0x60] sm:$0xff]  ;;  %v158_v62 = vld [vmem:[%s2684_s21 + $0x70] sm:$0xff] }
  0x2a   : > { %2132 = vmatpush3.bf16.xpose.msk.msra.mxu0 %vm2575_vm1, %v2130_v53  ;;  %v137_v53 = vld [vmem:[%s2679_s18 + $0x50] sm:$0xff]  ;;  %v140_v59 = vld [vmem:[%s2679_s18 + $0x68] sm:$0xff]  ;;  %v142_v63 = vld [vmem:[%s2679_s18 + $0x78] sm:$0xff] }
  0x2b   : > { %2180 = vmatpush3.bf16.xpose.msk.msra.mxu1 %vm2575_vm1, %v2178_v54  ;;  %2135 = vmatprep.subr.msk.bf16.mxu0 %vm2575_vm1, %v2133_v55  ;;  %v154_v54 = vld [vmem:[%s2684_s21 + $0x50] sm:$0xff]  ;;  %v138_v55 = vld [vmem:[%s2679_s18 + $0x58] sm:$0xff]  ;;  %v157_v60 = vld [vmem:[%s2684_s21 + $0x68] sm:$0xff] }
  0x2c   : > { %2183 = vmatprep.subr.msk.bf16.mxu1 %vm2575_vm1, %v2181_v56  ;;  %v155_v56 = vld [vmem:[%s2684_s21 + $0x58] sm:$0xff] }
  0x2d   : > { %v159_v0 = vld [vmem:[%s2684_s21 + $0x78] sm:$0xff] }
  0x32   : > { %2138 = vmatpush3.bf16.xpose.msk.msra.mxu0 %vm2575_vm1, %v2136_v1 }
  0x33   : > { %2186 = vmatpush3.bf16.xpose.msk.msra.mxu1 %vm2575_vm1, %v2184_v2  ;;  %2141 = vmatprep.subr.msk.bf16.mxu0 %vm2575_vm1, %v2139_v3 }
  0x34   : > { %2189 = vmatprep.subr.msk.bf16.mxu1 %vm2575_vm1, %v2187_v5 }
  0x3a   : > { %2144 = vmatpush3.bf16.xpose.msk.msra.mxu0 %vm2575_vm1, %v2142_v14 }
  0x3b   : > { %2192 = vmatpush3.bf16.xpose.msk.msra.mxu1 %vm2575_vm1, %v2190_v15  ;;  %2147 = vmatprep.subr.msk.bf16.mxu0 %vm2575_vm1, %v2145_v16 }
  0x3c   : > { %2195 = vmatprep.subr.msk.bf16.mxu1 %vm2575_vm1, %v2193_v17 }
  0x42   : > { %2150 = vmatpush3.bf16.xpose.msk.msra.mxu0 %vm2575_vm1, %v2148_v26 }
  0x43   : > { %2198 = vmatpush3.bf16.xpose.msk.msra.mxu1 %vm2575_vm1, %v2196_v27  ;;  %2153 = vmatprep.subr.msk.bf16.mxu0 %vm2575_vm1, %v2151_v28 }
  0x44   : > { %2201 = vmatprep.subr.msk.bf16.mxu1 %vm2575_vm1, %v2199_v29 }
  0x4a   : > { %2156 = vmatpush3.bf16.xpose.msk.msra.mxu0 %vm2575_vm1, %v2154_v34 }
  0x4b   : > { %2204 = vmatpush3.bf16.xpose.msk.msra.mxu1 %vm2575_vm1, %v2202_v35 }
  0x51   : > { %2014 = vmatmul.mubr.msk.f32.vlgmr.msra.gmra.mrb[0].mxu0 %vm224_vm0, %v2700_v46  ;;  %v150_v46 = vld [vmem:[%s2684_s21 + $0x30] sm:$0xff] }
  0x52   : > { %2078 = vmatmul.mubr.msk.f32.vlgmr.msra.gmra.mrb[0].mxu1 %vm224_vm0, %v2713_v49  ;;  %2015 = vmatprep.mubr.msk.f32.mxu0 %vm224_vm0, %v128_v36  ;;  %v135_v49 = vld [vmem:[%s2679_s18 + $0x40] sm:$0xff]  ;;  %s1880_s18 = sshll.u32 %s1876_s10, 4 }
  0x53   : > { %2079 = vmatprep.mubr.msk.f32.mxu1 %vm224_vm0, %v145_v37  ;;  %p120_p3 = scmp.lt.s32.totalorder %s1880_s18, 31 }
  0x55   : > { %2016 = vmatmul.mubr.msk.f32.gmra.mrb[2].mxu0 %vm224_vm0, %v128_v36  ;;  %s4746_s18 = smov (!%p120_p3, %s1880_s18), 31 }
  0x56   : > { %2080 = vmatmul.mubr.msk.f32.gmra.mrb[2].mxu1 %vm224_vm0, %v145_v37  ;;  %2017 = vmatprep.mubr.msk.f32.mxu0 %vm224_vm0, %v129_v38  ;;  %s1881_s21 = sshll.u32 %s4746_s18, 3 }
  0x57   : > { %2081 = vmatprep.mubr.msk.f32.mxu1 %vm224_vm0, %v146_v39  ;;  %s4228_s24 = scalar_lea.vmem %s4267_s2, %s1881_s21 }
  0x59   : > { %2018 = vmatmul.mubr.msk.f32.gmra.mrb[4].mxu0 %vm224_vm0, %v129_v38 }
  0x5a   : > { %2082 = vmatmul.mubr.msk.f32.gmra.mrb[4].mxu1 %vm224_vm0, %v146_v39  ;;  %2019 = vmatprep.mubr.msk.f32.mxu0 %vm224_vm0, %v130_v4 }
  0x5b   : > { %2083 = vmatprep.mubr.msk.f32.mxu1 %vm224_vm0, %v147_v40 }
  0x5d   : > { %2020 = vmatmul.mubr.msk.f32.gmra.mrb[6].mxu0 %vm224_vm0, %v130_v4 }
  0x5e   : > { %2084 = vmatmul.mubr.msk.f32.gmra.mrb[6].mxu1 %vm224_vm0, %v147_v40  ;;  %2021 = vmatprep.mubr.msk.f32.mxu0 %vm224_vm0, %v131_v41 }
  0x5f   : > { %2085 = vmatprep.mubr.msk.f32.mxu1 %vm224_vm0, %v148_v42 }
  0x61   : > { %2022 = vmatmul.mubr.msk.f32.gmra.mrb[8].mxu0 %vm224_vm0, %v131_v41 }
  0x62   : > { %2086 = vmatmul.mubr.msk.f32.gmra.mrb[8].mxu1 %vm224_vm0, %v148_v42  ;;  %2023 = vmatprep.mubr.msk.f32.mxu0 %vm224_vm0, %v132_v43 }
  0x63   : > { %2087 = vmatprep.mubr.msk.f32.mxu1 %vm224_vm0, %v149_v44 }
  0x65   : > { %2024 = vmatmul.mubr.msk.f32.gmra.mrb[10].mxu0 %vm224_vm0, %v132_v43 }
  0x66   : > { %2088 = vmatmul.mubr.msk.f32.gmra.mrb[10].mxu1 %vm224_vm0, %v149_v44  ;;  %2025 = vmatprep.mubr.msk.f32.mxu0 %vm224_vm0, %v133_v45 }
  0x67   : > { %2089 = vmatprep.mubr.msk.f32.mxu1 %vm224_vm0, %v150_v46 }
  0x69   : > { %2026 = vmatmul.mubr.msk.f32.gmra.mrb[12].mxu0 %vm224_vm0, %v133_v45 }
  0x6a   : > { %2090 = vmatmul.mubr.msk.f32.gmra.mrb[12].mxu1 %vm224_vm0, %v150_v46  ;;  %2027 = vmatprep.mubr.msk.f32.mxu0 %vm224_vm0, %v134_v47 }
  0x6b   : > { %2091 = vmatprep.mubr.msk.f32.mxu1 %vm224_vm0, %v151_v48 }
  0x6d   : > { %2028 = vmatmul.mubr.msk.f32.gmra.mrb[14].mxu0 %vm224_vm0, %v134_v47 }
  0x6e   : > { %2092 = vmatmul.mubr.msk.f32.gmra.mrb[14].mxu1 %vm224_vm0, %v151_v48  ;;  %2029 = vmatprep.mubr.msk.f32.mxu0 %vm224_vm0, %v135_v49 }
  0x6f   : > { %2093 = vmatprep.mubr.msk.f32.mxu1 %vm224_vm0, %v152_v50 }
  0x71   : > { %2030 = vmatmul.mubr.msk.f32.gmra.mrb[16].mxu0 %vm224_vm0, %v135_v49 }
  0x72   : > { %2094 = vmatmul.mubr.msk.f32.gmra.mrb[16].mxu1 %vm224_vm0, %v152_v50  ;;  %2031 = vmatprep.mubr.msk.f32.mxu0 %vm224_vm0, %v136_v51 }
  0x73   : > { %2095 = vmatprep.mubr.msk.f32.mxu1 %vm224_vm0, %v153_v52 }
  0x75   : > { %2032 = vmatmul.mubr.msk.f32.gmra.mrb[18].mxu0 %vm224_vm0, %v136_v51 }
  0x76   : > { %2096 = vmatmul.mubr.msk.f32.gmra.mrb[18].mxu1 %vm224_vm0, %v153_v52  ;;  %2033 = vmatprep.mubr.msk.f32.mxu0 %vm224_vm0, %v137_v53 }
  0x77   : > { %2097 = vmatprep.mubr.msk.f32.mxu1 %vm224_vm0, %v154_v54 }
  0x79   : > { %2034 = vmatmul.mubr.msk.f32.gmra.mrb[20].mxu0 %vm224_vm0, %v137_v53 }
  0x7a   : > { %2098 = vmatmul.mubr.msk.f32.gmra.mrb[20].mxu1 %vm224_vm0, %v154_v54  ;;  %2035 = vmatprep.mubr.msk.f32.mxu0 %vm224_vm0, %v138_v55 }
  0x7b   : > { %2099 = vmatprep.mubr.msk.f32.mxu1 %vm224_vm0, %v155_v56 }
  0x7d   : > { %2036 = vmatmul.mubr.msk.f32.gmra.mrb[22].mxu0 %vm224_vm0, %v138_v55 }
  0x7e   : > { %2100 = vmatmul.mubr.msk.f32.gmra.mrb[22].mxu1 %vm224_vm0, %v155_v56  ;;  %2037 = vmatprep.mubr.msk.f32.mxu0 %vm224_vm0, %v139_v57 }
  0x7f   : > { %2101 = vmatprep.mubr.msk.f32.mxu1 %vm224_vm0, %v156_v58 }
  0x81   : > { %2038 = vmatmul.mubr.msk.f32.gmra.mrb[24].mxu0 %vm224_vm0, %v139_v57 }
  0x82   : > { %2102 = vmatmul.mubr.msk.f32.gmra.mrb[24].mxu1 %vm224_vm0, %v156_v58  ;;  %2039 = vmatprep.mubr.msk.f32.mxu0 %vm224_vm0, %v140_v59 }
  0x83   : > { %2103 = vmatprep.mubr.msk.f32.mxu1 %vm224_vm0, %v157_v60 }
  0x85   : > { %2040 = vmatmul.mubr.msk.f32.gmra.mrb[26].mxu0 %vm224_vm0, %v140_v59 }
  0x86   : > { %2104 = vmatmul.mubr.msk.f32.gmra.mrb[26].mxu1 %vm224_vm0, %v157_v60  ;;  %2041 = vmatprep.mubr.msk.f32.mxu0 %vm224_vm0, %v141_v61 }
  0x87   : > { %2105 = vmatprep.mubr.msk.f32.mxu1 %vm224_vm0, %v158_v62 }
  0x89   : > { %2042 = vmatmul.mubr.msk.f32.gmra.mrb[28].mxu0 %vm224_vm0, %v141_v61 }
  0x8a   : > { %2106 = vmatmul.mubr.msk.f32.gmra.mrb[28].mxu1 %vm224_vm0, %v158_v62  ;;  %2043 = vmatprep.mubr.msk.f32.mxu0 %vm224_vm0, %v142_v63 }
  0x8b   : > { %2107 = vmatprep.mubr.msk.f32.mxu1 %vm224_vm0, %v159_v0 }
  0x8d   : > { %2044 = vmatmul.mubr.msk.f32.gmra.mrb[30].mxu0 %vm224_vm0, %v142_v63 }
  0x8e   : > { %2108 = vmatmul.mubr.msk.f32.gmra.mrb[30].mxu1 %vm224_vm0, %v159_v0 }
 0x124   : > { %v2942_v1 = vpop.f32.mrb[0].mxu0 }
 0x125   : > { %v2944_v2 = vpop.f32.mrb[0].mxu1  ;;  %v2946_v3 = vpop.f32.mrb[1].mxu0 }
 0x126   : > { %v2948_v5 = vpop.f32.mrb[1].mxu1  ;;  %v835_v6 = vmax.f32 %v2942_v1, %v2946_v3 }
 0x127   : > { %v1139_v7 = vmax.f32 %v2944_v2, %v2948_v5 }
 0x128   : > { %836 = vmax.xlane.f32.xlu0 %v835_v6  ;;  %v2956_v9 = vpop.f32.mrb[2].mxu0 }
 0x129   : > { %v2954_v8 = vpop.f32.mrb[2].mxu1  ;;  %v2960_v11 = vpop.f32.mrb[3].mxu0 }
 0x12a   : > { %v2958_v10 = vpop.f32.mrb[3].mxu1  ;;  %v838_v13 = vmax.f32 %v2956_v9, %v2960_v11 }
 0x12b   : > { %v1142_v12 = vmax.f32 %v2954_v8, %v2958_v10 }
 0x12c   : > { %1140 = vmax.xlane.f32.xlu0 %v1139_v7  ;;  %v2966_v14 = vpop.f32.mrb[4].mxu0 }
 0x12d   : > { %1143 = vmax.xlane.f32.xlu1 %v1142_v12  ;;  %v2968_v15 = vpop.f32.mrb[4].mxu1  ;;  %v2970_v16 = vpop.f32.mrb[5].mxu0 }
 0x12e   : > { %v2972_v17 = vpop.f32.mrb[5].mxu1  ;;  %v841_v18 = vmax.f32 %v2966_v14, %v2970_v16 }
 0x12f   : > { %v1145_v19 = vmax.f32 %v2968_v15, %v2972_v17 }
 0x130   : > { %839 = vmax.xlane.f32.xlu0 %v838_v13  ;;  %v2978_v20 = vpop.f32.mrb[6].mxu0 }
 0x131   : > { %842 = vmax.xlane.f32.xlu1 %v841_v18  ;;  %v2980_v21 = vpop.f32.mrb[6].mxu1  ;;  %v2982_v22 = vpop.f32.mrb[7].mxu0 }
 0x132   : > { %v2984_v23 = vpop.f32.mrb[7].mxu1  ;;  %v844_v24 = vmax.f32 %v2978_v20, %v2982_v22 }
 0x133   : > { %v1148_v25 = vmax.f32 %v2980_v21, %v2984_v23 }
 0x134   : > { %1146 = vmax.xlane.f32.xlu0 %v1145_v19  ;;  %v2990_v26 = vpop.f32.mrb[8].mxu0 }
 0x135   : > { %845 = vmax.xlane.f32.xlu1 %v844_v24  ;;  %v2992_v27 = vpop.f32.mrb[8].mxu1  ;;  %v2994_v28 = vpop.f32.mrb[9].mxu0 }
 0x136   : > { %v2996_v29 = vpop.f32.mrb[9].mxu1  ;;  %v847_v30 = vmax.f32 %v2990_v26, %v2994_v28 }
 0x137   : > { %v1151_v31 = vmax.f32 %v2992_v27, %v2996_v29 }
 0x138   : > { %848 = vmax.xlane.f32.xlu0 %v847_v30  ;;  %v3002_v32 = vpop.f32.mrb[10].mxu0 }
 0x139   : > { %1149 = vmax.xlane.f32.xlu1 %v1148_v25  ;;  %v3004_v33 = vpop.f32.mrb[10].mxu1  ;;  %v3006_v34 = vpop.f32.mrb[11].mxu0 }
 0x13a   : > { %v3008_v35 = vpop.f32.mrb[11].mxu1  ;;  %v850_v36 = vmax.f32 %v3002_v32, %v3006_v34 }
 0x13b   : > { %v1154_v37 = vmax.f32 %v3004_v33, %v3008_v35 }
 0x13c   : > { %1152 = vmax.xlane.f32.xlu0 %v1151_v31  ;;  %v3014_v38 = vpop.f32.mrb[12].mxu0 }
 0x13d   : > { %851 = vmax.xlane.f32.xlu1 %v850_v36  ;;  %v3016_v39 = vpop.f32.mrb[12].mxu1  ;;  %v3018_v4 = vpop.f32.mrb[13].mxu0 }
 0x13e   : > { %v3020_v40 = vpop.f32.mrb[13].mxu1  ;;  %v853_v41 = vmax.f32 %v3014_v38, %v3018_v4 }
 0x13f   : > { %v1157_v42 = vmax.f32 %v3016_v39, %v3020_v40 }
 0x140   : > { %854 = vmax.xlane.f32.xlu0 %v853_v41  ;;  %v3026_v43 = vpop.f32.mrb[14].mxu0 }
 0x141   : > { %1155 = vmax.xlane.f32.xlu1 %v1154_v37  ;;  %v3028_v44 = vpop.f32.mrb[14].mxu1  ;;  %v3030_v45 = vpop.f32.mrb[15].mxu0 }
 0x142   : > { %v3032_v46 = vpop.f32.mrb[15].mxu1  ;;  %v856_v47 = vmax.f32 %v3026_v43, %v3030_v45 }
 0x143   : > { %v1160_v48 = vmax.f32 %v3028_v44, %v3032_v46 }
 0x144   : > { %1158 = vmax.xlane.f32.xlu0 %v1157_v42  ;;  %v3038_v49 = vpop.f32.mrb[16].mxu0 }
 0x145   : > { %857 = vmax.xlane.f32.xlu1 %v856_v47  ;;  %v3040_v50 = vpop.f32.mrb[16].mxu1  ;;  %v3042_v51 = vpop.f32.mrb[17].mxu0 }
 0x146   : > { %v3044_v52 = vpop.f32.mrb[17].mxu1  ;;  %v859_v53 = vmax.f32 %v3038_v49, %v3042_v51 }
 0x147   : > { %v1163_v54 = vmax.f32 %v3040_v50, %v3044_v52 }
 0x148   : > { %860 = vmax.xlane.f32.xlu0 %v859_v53  ;;  %v3050_v55 = vpop.f32.mrb[18].mxu0 }
 0x149   : > { %1161 = vmax.xlane.f32.xlu1 %v1160_v48  ;;  %v3052_v56 = vpop.f32.mrb[18].mxu1  ;;  %v3054_v57 = vpop.f32.mrb[19].mxu0 }
 0x14a   : > { %v3056_v58 = vpop.f32.mrb[19].mxu1  ;;  %v862_v59 = vmax.f32 %v3050_v55, %v3054_v57 }
 0x14b   : > { %v1166_v60 = vmax.f32 %v3052_v56, %v3056_v58 }
 0x14c   : > { %1164 = vmax.xlane.f32.xlu0 %v1163_v54  ;;  %v3062_v61 = vpop.f32.mrb[20].mxu0 }
 0x14d   : > { %863 = vmax.xlane.f32.xlu1 %v862_v59  ;;  %v3064_v62 = vpop.f32.mrb[20].mxu1  ;;  %v3066_v63 = vpop.f32.mrb[21].mxu0 }
 0x14e   : > { %v3068_v0 = vpop.f32.mrb[21].mxu1  ;;  %v865_v6 = vmax.f32 %v3062_v61, %v3066_v63 }
 0x14f   : > { %v1169_v7 = vmax.f32 %v3064_v62, %v3068_v0 }
 0x150   : > { %866 = vmax.xlane.f32.xlu0 %v865_v6  ;;  %v3074_v12 = vpop.f32.mrb[22].mxu0 }
 0x151   : > { %1167 = vmax.xlane.f32.xlu1 %v1166_v60  ;;  %v3076_v13 = vpop.f32.mrb[22].mxu1  ;;  %v3078_v18 = vpop.f32.mrb[23].mxu0 }
 0x152   : > { %v3080_v19 = vpop.f32.mrb[23].mxu1  ;;  %v868_v24 = vmax.f32 %v3074_v12, %v3078_v18 }
 0x153   : > { %v1172_v25 = vmax.f32 %v3076_v13, %v3080_v19 }
 0x154   : > { %1170 = vmax.xlane.f32.xlu0 %v1169_v7  ;;  %v3086_v30 = vpop.f32.mrb[24].mxu0 }
 0x155   : > { %869 = vmax.xlane.f32.xlu1 %v868_v24  ;;  %v3088_v31 = vpop.f32.mrb[24].mxu1  ;;  %v3090_v36 = vpop.f32.mrb[25].mxu0 }
 0x156   : > { %4436 = vst [vmem:[#allocation2_spill] sm:$0xff] %v3088_v31  ;;  %v3092_v37 = vpop.f32.mrb[25].mxu1  ;;  %v871_v41 = vmax.f32 %v3086_v30, %v3090_v36 }
 0x157   : > { %4437 = vst [vmem:[#allocation3_spill] sm:$0xff] %v3092_v37  ;;  %v1175_v42 = vmax.f32 %v3088_v31, %v3092_v37 }
 0x158   : > { %872 = vmax.xlane.f32.xlu0 %v871_v41  ;;  %v3098_v47 = vpop.f32.mrb[26].mxu0 }
 0x159   : > { %1173 = vmax.xlane.f32.xlu1 %v1172_v25  ;;  %4438 = vst [vmem:[#allocation4_spill] sm:$0xff] %v3098_v47  ;;  %v3100_v48 = vpop.f32.mrb[26].mxu1  ;;  %v3102_v53 = vpop.f32.mrb[27].mxu0 }
 0x15a   : > { %4439 = vst [vmem:[#allocation5_spill] sm:$0xff] %v3100_v48  ;;  %4440 = vst [vmem:[#allocation6_spill] sm:$0xff] %v3102_v53  ;;  %v3104_v54 = vpop.f32.mrb[27].mxu1  ;;  %v874_v59 = vmax.f32 %v3098_v47, %v3102_v53 }
 0x15b   : > { %4441 = vst [vmem:[#allocation7_spill] sm:$0xff] %v3104_v54  ;;  %v1178_v60 = vmax.f32 %v3100_v48, %v3104_v54 }
 0x15c   : > { %1176 = vmax.xlane.f32.xlu0 %v1175_v42  ;;  %v3110_v6 = vpop.f32.mrb[28].mxu0 }
 0x15d   : > { %875 = vmax.xlane.f32.xlu1 %v874_v59  ;;  %4442 = vst [vmem:[#allocation8_spill] sm:$0xff] %v3110_v6  ;;  %v3112_v7 = vpop.f32.mrb[28].mxu1  ;;  %v3114_v24 = vpop.f32.mrb[29].mxu0 }
 0x15e   : > { %4443 = vst [vmem:[#allocation9_spill] sm:$0xff] %v3112_v7  ;;  %4444 = vst [vmem:[#allocation10_spill] sm:$0xff] %v3114_v24  ;;  %v3116_v25 = vpop.f32.mrb[29].mxu1  ;;  %v877_v41 = vmax.f32 %v3110_v6, %v3114_v24 }
 0x15f   : > { %4445 = vst [vmem:[#allocation11_spill] sm:$0xff] %v3116_v25  ;;  %v1181_v37 = vmax.f32 %v3112_v7, %v3116_v25 }
 0x160   : > { %878 = vmax.xlane.f32.xlu0 %v877_v41  ;;  %v3122_v53 = vpop.f32.mrb[30].mxu0 }
 0x161   : > { %1179 = vmax.xlane.f32.xlu1 %v1178_v60  ;;  %v3124_v42 = vpop.f32.mrb[30].mxu1  ;;  %v3126_v59 = vpop.f32.mrb[31].mxu0 }
 0x162   : > { %4446 = vst [vmem:[#allocation12_spill] sm:$0xff] %v3126_v59  ;;  %v3128_v54 = vpop.f32.mrb[31].mxu1  ;;  %v880_v48 = vmax.f32 %v3122_v53, %v3126_v59 }
 0x163   : > { %v1184_v47 = vmax.f32 %v3124_v42, %v3128_v54 }
 0x164   : > { %1182 = vmax.xlane.f32.xlu0 %v1181_v37 }
 0x165   : > { %881 = vmax.xlane.f32.xlu1 %v880_v48 }
 0x169   : > { %1185 = vmax.xlane.f32.xlu1 %v1184_v47 }
 0x1b5   : > { %v837_v25 = vpop.xlane.xlu0 %836 }
 0x1b6   : > { %v3135_v60 = vsub.f32 %v2942_v1, %v837_v25  ;;  %v3138_v41 = vsub.f32 %v2946_v3, %v837_v25 }
 0x1b8   : > { %4447 = vst [vmem:[#allocation13_spill] sm:$0xff] %v3138_v41  ;;  %v915_v7 = vmul.f32 1.442695, %v3135_v60  ;;  %v917_v24 = vmul.f32 1.442695, %v3138_v41 }
 0x1b9   : > { %v1141_v31 = vpop.xlane.xlu0 %1140 }
 0x1ba   : > { %v1144_v6 = vpop.xlane.xlu1 %1143  ;;  %2213 = vpow2.f32 %v915_v7  ;;  %v3149_v47 = vsub.f32 %v2944_v2, %v1141_v31  ;;  %v3152_v1 = vsub.f32 %v2948_v5, %v1141_v31 }
 0x1bb   : > { %v3143_v59 = vsub.f32 %v2954_v8, %v1144_v6  ;;  %v3146_v37 = vsub.f32 %v2958_v10, %v1144_v6  ;;  %2215 = vpow2.f32 %v917_v24 }
 0x1bc   : > { %v1219_v25 = vmul.f32 1.442695, %v3149_v47  ;;  %v1221_v7 = vmul.f32 1.442695, %v3152_v1 }
 0x1bd   : > { %4448 = vst [vmem:[#allocation14_spill] sm:$0xff] %v3146_v37  ;;  %v1223_v3 = vmul.f32 1.442695, %v3143_v59  ;;  %v1225_v48 = vmul.f32 1.442695, %v3146_v37  ;;  %v840_v8 = vpop.xlane.xlu0 %839 }
 0x1be   : > { %v843_v41 = vpop.xlane.xlu1 %842  ;;  %v3159_v10 = vsub.f32 %v2956_v9, %v840_v8  ;;  %v3162_v2 = vsub.f32 %v2960_v11, %v840_v8 }
 0x1bf   : > { %2217 = vpow2.f32 %v1223_v3  ;;  %v3165_v5 = vsub.f32 %v2966_v14, %v843_v41  ;;  %v3168_v31 = vsub.f32 %v2970_v16, %v843_v41 }
 0x1c0   : > { %2219 = vpow2.f32 %v1225_v48  ;;  %v919_v6 = vmul.f32 1.442695, %v3159_v10  ;;  %v921_v24 = vmul.f32 1.442695, %v3162_v2 }
 0x1c1   : > { %2221 = vpow2.f32 %v1219_v25  ;;  %v923_v3 = vmul.f32 1.442695, %v3165_v5  ;;  %v925_v9 = vmul.f32 1.442695, %v3168_v31  ;;  %v1147_v37 = vpop.xlane.xlu0 %1146 }
 0x1c2   : > { %2223 = vpow2.f32 %v1221_v7  ;;  %v846_v11 = vpop.xlane.xlu1 %845  ;;  %v3175_v14 = vsub.f32 %v2968_v15, %v1147_v37  ;;  %v3178_v48 = vsub.f32 %v2972_v17, %v1147_v37 }
 0x1c3   : > { %2225 = vpow2.f32 %v919_v6  ;;  %v3181_v16 = vsub.f32 %v2978_v20, %v846_v11  ;;  %v3184_v41 = vsub.f32 %v2982_v22, %v846_v11 }
 0x1c4   : > { %2227 = vpow2.f32 %v921_v24  ;;  %v3186_v25 = vpop.eup %2213  ;;  %v1227_v7 = vmul.f32 1.442695, %v3175_v14  ;;  %v1229_v8 = vmul.f32 1.442695, %v3178_v48 }
 0x1c5   : > { %4449 = vst [vmem:[#allocation15_spill] sm:$0xff] %v3181_v16  ;;  %4450 = vst [vmem:[#allocation16_spill] sm:$0xff] %v3184_v41  ;;  %2229 = vpow2.f32 %v923_v3  ;;  %v927_v15 = vmul.f32 1.442695, %v3181_v16  ;;  %v3191_v6 = vpop.eup %2215  ;;  %v929_v17 = vmul.f32 1.442695, %v3184_v41  ;;  %v849_v37 = vpop.xlane.xlu0 %848 }
 0x1c6   : > { %2231 = vpow2.f32 %v925_v9  ;;  %v1150_v20 = vpop.xlane.xlu1 %1149  ;;  %v3201_v3 = vsub.f32 %v2990_v26, %v849_v37  ;;  %v3204_v11 = vsub.f32 %v2994_v28, %v849_v37  ;;  %v979_v9 = vadd.f32 %v3191_v6, %v3186_v25 }
 0x1c7   : > { %2233 = vpow2.f32 %v1227_v7  ;;  %v3195_v22 = vsub.f32 %v2980_v21, %v1150_v20  ;;  %v3198_v24 = vsub.f32 %v2984_v23, %v1150_v20 }
 0x1c8   : > { %2235 = vpow2.f32 %v1229_v8  ;;  %4453 = vst [vmem:[#allocation19_spill] sm:$0xff] %v3204_v11  ;;  %v931_v23 = vmul.f32 1.442695, %v3201_v3  ;;  %v933_v26 = vmul.f32 1.442695, %v3204_v11  ;;  %980 = vadd.xlane.f32.xlu0 %v979_v9 }
 0x1c9   : > { %4451 = vst [vmem:[#allocation17_spill] sm:$0xff] %v3195_v22  ;;  %4452 = vst [vmem:[#allocation18_spill] sm:$0xff] %v3198_v24  ;;  %v3208_v41 = vpop.eup %2217  ;;  %2237 = vpow2.f32 %v927_v15  ;;  %v1231_v7 = vmul.f32 1.442695, %v3195_v22  ;;  %v1233_v21 = vmul.f32 1.442695, %v3198_v24  ;;  %v1153_v28 = vpop.xlane.xlu0 %1152 }
 0x1ca   : > { %v3213_v20 = vpop.eup %2219  ;;  %2239 = vpow2.f32 %v929_v17  ;;  %v852_v8 = vpop.xlane.xlu1 %851  ;;  %v3219_v16 = vsub.f32 %v2992_v27, %v1153_v28  ;;  %v3222_v15 = vsub.f32 %v2996_v29, %v1153_v28 }
 0x1cb   : > { %4454 = vst [vmem:[#allocation20_spill] sm:$0xff] %v3213_v20  ;;  %v3216_v37 = vpop.eup %2221  ;;  %2241 = vpow2.f32 %v1231_v7  ;;  %v3225_v24 = vsub.f32 %v3002_v32, %v852_v8  ;;  %v3230_v17 = vsub.f32 %v3006_v34, %v852_v8 }
 0x1cc   : > { %4455 = vst [vmem:[#allocation21_spill] sm:$0xff] %v3219_v16  ;;  %4456 = vst [vmem:[#allocation22_spill] sm:$0xff] %v3222_v15  ;;  %v3227_v22 = vpop.eup %2223  ;;  %2243 = vpow2.f32 %v1233_v21  ;;  %v1235_v7 = vmul.f32 1.442695, %v3219_v16  ;;  %v1237_v27 = vmul.f32 1.442695, %v3222_v15 }
 0x1cd   : > { %4457 = vst [vmem:[#allocation23_spill] sm:$0xff] %v3225_v24  ;;  %4458 = vst [vmem:[#allocation24_spill] sm:$0xff] %v3230_v17  ;;  %v3232_v9 = vpop.eup %2225  ;;  %2245 = vpow2.f32 %v931_v23  ;;  %v935_v11 = vmul.f32 1.442695, %v3225_v24  ;;  %v937_v32 = vmul.f32 1.442695, %v3230_v17  ;;  %v1283_v21 = vadd.f32 %v3227_v22, %v3216_v37  ;;  %v855_v34 = vpop.xlane.xlu0 %854 }
 0x1ce   : > { %v3237_v29 = vpop.eup %2227  ;;  %2247 = vpow2.f32 %v933_v26  ;;  %v1156_v28 = vpop.xlane.xlu1 %1155  ;;  %v3251_v24 = vsub.f32 %v3014_v38, %v855_v34  ;;  %v3256_v17 = vsub.f32 %v3018_v4, %v855_v34 }
 0x1cf   : > { %4459 = vst [vmem:[#allocation25_spill] sm:$0xff] %v3237_v29  ;;  %v3242_v8 = vpop.eup %2229  ;;  %2249 = vpow2.f32 %v1235_v7  ;;  %v3245_v23 = vsub.f32 %v3004_v33, %v1156_v28  ;;  %v3248_v15 = vsub.f32 %v3008_v35, %v1156_v28  ;;  %1284 = vadd.xlane.f32.xlu0 %v1283_v21  ;;  %v982_v16 = vadd.f32 %v3237_v29, %v3232_v9 }
 0x1d0   : > { %4462 = vst [vmem:[#allocation28_spill] sm:$0xff] %v3251_v24  ;;  %v3253_v26 = vpop.eup %2231  ;;  %2251 = vpow2.f32 %v1237_v27  ;;  %4463 = vst [vmem:[#allocation29_spill] sm:$0xff] %v3256_v17  ;;  %v939_v38 = vmul.f32 1.442695, %v3251_v24  ;;  %v941_v27 = vmul.f32 1.442695, %v3256_v17 }
 0x1d1   : > { %4460 = vst [vmem:[#allocation26_spill] sm:$0xff] %v3245_v23  ;;  %4461 = vst [vmem:[#allocation27_spill] sm:$0xff] %v3248_v15  ;;  %v3260_v7 = vpop.eup %2233  ;;  %2253 = vpow2.f32 %v935_v11  ;;  %v1239_v33 = vmul.f32 1.442695, %v3245_v23  ;;  %v1241_v35 = vmul.f32 1.442695, %v3248_v15  ;;  %v985_v4 = vadd.f32 %v3253_v26, %v3242_v8  ;;  %983 = vadd.xlane.f32.xlu1 %v982_v16  ;;  %v1159_v21 = vpop.xlane.xlu0 %1158 }
 0x1d2   : > { %v3265_v28 = vpop.eup %2235  ;;  %2255 = vpow2.f32 %v937_v32  ;;  %v858_v34 = vpop.xlane.xlu1 %857  ;;  %v3273_v11 = vsub.f32 %v3016_v39, %v1159_v21  ;;  %v3276_v15 = vsub.f32 %v3020_v40, %v1159_v21  ;;  %v1286_v39 = vadd.f32 %v3213_v20, %v3208_v41 }
 0x1d3   : > { %v3270_v29 = vpop.eup %2237  ;;  %2257 = vpow2.f32 %v1239_v33  ;;  %v3279_v23 = vsub.f32 %v3026_v43, %v858_v34  ;;  %986 = vadd.xlane.f32.xlu0 %v985_v4  ;;  %v3284_v16 = vsub.f32 %v3030_v45, %v858_v34  ;;  %v1289_v17 = vadd.f32 %v3265_v28, %v3260_v7 }
 0x1d4   : > { %4464 = vst [vmem:[#allocation30_spill] sm:$0xff] %v3270_v29  ;;  %4465 = vst [vmem:[#allocation31_spill] sm:$0xff] %v3276_v15  ;;  %v3281_v32 = vpop.eup %2239  ;;  %2259 = vpow2.f32 %v1241_v35  ;;  %v1243_v40 = vmul.f32 1.442695, %v3273_v11  ;;  %v1245_v43 = vmul.f32 1.442695, %v3276_v15 }
 0x1d5   : > { %4466 = vst [vmem:[#allocation32_spill] sm:$0xff] %v3279_v23  ;;  %4467 = vst [vmem:[#allocation33_spill] sm:$0xff] %v3281_v32  ;;  %v3290_v33 = vpop.eup %2241  ;;  %2261 = vpow2.f32 %v939_v38  ;;  %v943_v21 = vmul.f32 1.442695, %v3279_v23  ;;  %v945_v45 = vmul.f32 1.442695, %v3284_v16  ;;  %1287 = vadd.xlane.f32.xlu1 %v1286_v39  ;;  %v861_v34 = vpop.xlane.xlu0 %860  ;;  %v988_v39 = vadd.f32 %v3281_v32, %v3270_v29 }
 0x1d6   : > { %4468 = vst [vmem:[#allocation34_spill] sm:$0xff] %v3284_v16  ;;  %4469 = vst [vmem:[#allocation35_spill] sm:$0xff] %v3290_v33  ;;  %v3295_v35 = vpop.eup %2243  ;;  %2263 = vpow2.f32 %v941_v27  ;;  %v1162_v4 = vpop.xlane.xlu1 %1161  ;;  %v3307_v15 = vsub.f32 %v3038_v49, %v861_v34  ;;  %v3312_v27 = vsub.f32 %v3042_v51, %v861_v34 }
 0x1d7   : > { %4470 = vst [vmem:[#allocation36_spill] sm:$0xff] %v3295_v35  ;;  %v3298_v24 = vpop.eup %2245  ;;  %2265 = vpow2.f32 %v1243_v40  ;;  %v3301_v20 = vsub.f32 %v3028_v44, %v1162_v4  ;;  %v3304_v38 = vsub.f32 %v3032_v46, %v1162_v4  ;;  %1290 = vadd.xlane.f32.xlu0 %v1289_v17 }
 0x1d8   : > { %4473 = vst [vmem:[#allocation39_spill] sm:$0xff] %v3307_v15  ;;  %v3309_v23 = vpop.eup %2247  ;;  %2267 = vpow2.f32 %v1245_v43  ;;  %4474 = vst [vmem:[#allocation40_spill] sm:$0xff] %v3312_v27  ;;  %v947_v49 = vmul.f32 1.442695, %v3307_v15  ;;  %v949_v17 = vmul.f32 1.442695, %v3312_v27 }
 0x1d9   : > { %4471 = vst [vmem:[#allocation37_spill] sm:$0xff] %v3301_v20  ;;  %4472 = vst [vmem:[#allocation38_spill] sm:$0xff] %v3304_v38  ;;  %v3316_v40 = vpop.eup %2249  ;;  %2269 = vpow2.f32 %v943_v21  ;;  %v1247_v44 = vmul.f32 1.442695, %v3301_v20  ;;  %v1249_v46 = vmul.f32 1.442695, %v3304_v38  ;;  %v991_v51 = vadd.f32 %v3309_v23, %v3298_v24  ;;  %989 = vadd.xlane.f32.xlu1 %v988_v39  ;;  %v1165_v43 = vpop.xlane.xlu0 %1164 }
 0x1da   : > { %v3321_v4 = vpop.eup %2251  ;;  %2271 = vpow2.f32 %v945_v45  ;;  %v864_v34 = vpop.xlane.xlu1 %863  ;;  %v3329_v21 = vsub.f32 %v3040_v50, %v1165_v43  ;;  %v3332_v29 = vsub.f32 %v3044_v52, %v1165_v43  ;;  %v1292_v50 = vadd.f32 %v3295_v35, %v3290_v33 }
 0x1db   : > { %v3326_v32 = vpop.eup %2253  ;;  %2273 = vpow2.f32 %v1247_v44  ;;  %v3335_v38 = vsub.f32 %v3050_v55, %v864_v34  ;;  %992 = vadd.xlane.f32.xlu0 %v991_v51  ;;  %v3340_v39 = vsub.f32 %v3054_v57, %v864_v34  ;;  %v1295_v20 = vadd.f32 %v3321_v4, %v3316_v40 }
 0x1dc   : > { %4475 = vst [vmem:[#allocation41_spill] sm:$0xff] %v3326_v32  ;;  %v3337_v45 = vpop.eup %2255  ;;  %2275 = vpow2.f32 %v1249_v46  ;;  %v1251_v52 = vmul.f32 1.442695, %v3329_v21  ;;  %v1253_v55 = vmul.f32 1.442695, %v3332_v29 }
 0x1dd   : > { %4476 = vst [vmem:[#allocation42_spill] sm:$0xff] %v3335_v38  ;;  %4477 = vst [vmem:[#allocation43_spill] sm:$0xff] %v3337_v45  ;;  %v3346_v44 = vpop.eup %2257  ;;  %2277 = vpow2.f32 %v947_v49  ;;  %v951_v43 = vmul.f32 1.442695, %v3335_v38  ;;  %v953_v57 = vmul.f32 1.442695, %v3340_v39  ;;  %1293 = vadd.xlane.f32.xlu1 %v1292_v50  ;;  %v867_v34 = vpop.xlane.xlu0 %866  ;;  %v994_v50 = vadd.f32 %v3337_v45, %v3326_v32 }
 0x1de   : > { %4478 = vst [vmem:[#allocation44_spill] sm:$0xff] %v3340_v39  ;;  %4479 = vst [vmem:[#allocation45_spill] sm:$0xff] %v3346_v44  ;;  %v3351_v46 = vpop.eup %2259  ;;  %2279 = vpow2.f32 %v949_v17  ;;  %v1168_v51 = vpop.xlane.xlu1 %1167  ;;  %v3363_v33 = vsub.f32 %v3062_v61, %v867_v34  ;;  %v3368_v17 = vsub.f32 %v3066_v63, %v867_v34 }
 0x1df   : > { %4480 = vst [vmem:[#allocation46_spill] sm:$0xff] %v3351_v46  ;;  %v3354_v27 = vpop.eup %2261  ;;  %2281 = vpow2.f32 %v1251_v52  ;;  %v3357_v35 = vsub.f32 %v3052_v56, %v1168_v51  ;;  %v3360_v49 = vsub.f32 %v3056_v58, %v1168_v51  ;;  %1296 = vadd.xlane.f32.xlu0 %v1295_v20 }
 0x1e0   : > { %4481 = vst [vmem:[#allocation47_spill] sm:$0xff] %v3354_v27  ;;  %v3365_v38 = vpop.eup %2263  ;;  %2283 = vpow2.f32 %v1253_v55  ;;  %v955_v61 = vmul.f32 1.442695, %v3363_v33  ;;  %v957_v20 = vmul.f32 1.442695, %v3368_v17 }
 0x1e1   : > { %4482 = vst [vmem:[#allocation48_spill] sm:$0xff] %v3357_v35  ;;  %4483 = vst [vmem:[#allocation49_spill] sm:$0xff] %v3360_v49  ;;  %v3372_v52 = vpop.eup %2265  ;;  %2285 = vpow2.f32 %v951_v43  ;;  %v1255_v56 = vmul.f32 1.442695, %v3357_v35  ;;  %v1257_v58 = vmul.f32 1.442695, %v3360_v49  ;;  %v997_v63 = vadd.f32 %v3365_v38, %v3354_v27  ;;  %995 = vadd.xlane.f32.xlu1 %v994_v50  ;;  %v1171_v55 = vpop.xlane.xlu0 %1170 }
 0x1e2   : > { %4484 = vst [vmem:[#allocation50_spill] sm:$0xff] %v3365_v38  ;;  %4485 = vst [vmem:[#allocation51_spill] sm:$0xff] %v3372_v52  ;;  %v3377_v51 = vpop.eup %2267  ;;  %2287 = vpow2.f32 %v953_v57  ;;  %v870_v34 = vpop.xlane.xlu1 %869  ;;  %v3385_v43 = vsub.f32 %v3064_v62, %v1171_v55  ;;  %v3388_v32 = vsub.f32 %v3068_v0, %v1171_v55  ;;  %v1298_v62 = vadd.f32 %v3351_v46, %v3346_v44  ;;  %v4566_v35 = vld [vmem:[#allocation25_spill] sm:$0xff] }
 0x1e3   : > { %4486 = vst [vmem:[#allocation52_spill] sm:$0xff] %v3377_v51  ;;  %v3382_v45 = vpop.eup %2269  ;;  %2289 = vpow2.f32 %v1255_v56  ;;  %v3391_v49 = vsub.f32 %v3074_v12, %v870_v34  ;;  %998 = vadd.xlane.f32.xlu0 %v997_v63  ;;  %v3396_v50 = vsub.f32 %v3078_v18, %v870_v34  ;;  %v1301_v38 = vadd.f32 %v3377_v51, %v3372_v52  ;;  %v4579_v52 = vld [vmem:[#allocation26_spill] sm:$0xff] }
 0x1e4   : > { %4487 = vst [vmem:[#allocation53_spill] sm:$0xff] %v3382_v45  ;;  %4488 = vst [vmem:[#allocation54_spill] sm:$0xff] %v3388_v32  ;;  %v3393_v57 = vpop.eup %2271  ;;  %2291 = vpow2.f32 %v1257_v58  ;;  %v1259_v0 = vmul.f32 1.442695, %v3385_v43  ;;  %v1261_v12 = vmul.f32 1.442695, %v3388_v32 }
 0x1e5   : > { %4489 = vst [vmem:[#allocation55_spill] sm:$0xff] %v3391_v49  ;;  %4490 = vst [vmem:[#allocation56_spill] sm:$0xff] %v3393_v57  ;;  %v3402_v56 = vpop.eup %2273  ;;  %2293 = vpow2.f32 %v955_v61  ;;  %v959_v55 = vmul.f32 1.442695, %v3391_v49  ;;  %v961_v18 = vmul.f32 1.442695, %v3396_v50  ;;  %1299 = vadd.xlane.f32.xlu1 %v1298_v62  ;;  %v873_v34 = vpop.xlane.xlu0 %872  ;;  %v1000_v62 = vadd.f32 %v3393_v57, %v3382_v45 }
 0x1e6   : > { %4491 = vst [vmem:[#allocation57_spill] sm:$0xff] %v3396_v50  ;;  %4492 = vst [vmem:[#allocation58_spill] sm:$0xff] %v3402_v56  ;;  %v3407_v58 = vpop.eup %2275  ;;  %2295 = vpow2.f32 %v957_v20  ;;  %v1174_v63 = vpop.xlane.xlu1 %1173  ;;  %v3419_v44 = vsub.f32 %v3086_v30, %v873_v34  ;;  %v3424_v20 = vsub.f32 %v3090_v36, %v873_v34  ;;  %v4507_v50 = vld [vmem:[#allocation4_spill] sm:$0xff] }
 0x1e7   : > { %4493 = vst [vmem:[#allocation59_spill] sm:$0xff] %v3407_v58  ;;  %v3410_v51 = vpop.eup %2277  ;;  %2297 = vpow2.f32 %v1259_v0  ;;  %v3413_v46 = vsub.f32 %v3076_v13, %v1174_v63  ;;  %v3416_v61 = vsub.f32 %v3080_v19, %v1174_v63  ;;  %1302 = vadd.xlane.f32.xlu0 %v1301_v38 }
 0x1e8   : > { %4494 = vst [vmem:[#allocation60_spill] sm:$0xff] %v3410_v51  ;;  %4497 = vst [vmem:[#allocation63_spill] sm:$0xff] %v3419_v44  ;;  %v3421_v49 = vpop.eup %2279  ;;  %2299 = vpow2.f32 %v1261_v12  ;;  %v963_v30 = vmul.f32 1.442695, %v3419_v44  ;;  %v965_v38 = vmul.f32 1.442695, %v3424_v20 }
 0x1e9   : > { %4495 = vst [vmem:[#allocation61_spill] sm:$0xff] %v3413_v46  ;;  %4496 = vst [vmem:[#allocation62_spill] sm:$0xff] %v3416_v61  ;;  %v3428_v0 = vpop.eup %2281  ;;  %2301 = vpow2.f32 %v959_v55  ;;  %v1263_v13 = vmul.f32 1.442695, %v3413_v46  ;;  %v1265_v19 = vmul.f32 1.442695, %v3416_v61  ;;  %v1003_v36 = vadd.f32 %v3421_v49, %v3410_v51  ;;  %1001 = vadd.xlane.f32.xlu1 %v1000_v62  ;;  %v1177_v12 = vpop.xlane.xlu0 %1176 }
 0x1ea   : > { %4498 = vst [vmem:[#allocation64_spill] sm:$0xff] %v3421_v49  ;;  %4499 = vst [vmem:[#allocation65_spill] sm:$0xff] %v3424_v20  ;;  %v3433_v63 = vpop.eup %2283  ;;  %2303 = vpow2.f32 %v961_v18  ;;  %v876_v34 = vpop.xlane.xlu1 %875  ;;  %v4503_v55 = vld [vmem:[#allocation2_spill] sm:$0xff]  ;;  %v4505_v61 = vld [vmem:[#allocation3_spill] sm:$0xff] }
 0x1eb   : > { %4500 = vst [vmem:[#allocation66_spill] sm:$0xff] %v3428_v0  ;;  %4501 = vst [vmem:[#allocation67_spill] sm:$0xff] %v3433_v63  ;;  %v3438_v57 = vpop.eup %2285  ;;  %2305 = vpow2.f32 %v1263_v13  ;;  %v3441_v45 = vsub.f32 %v4503_v55, %v1177_v12  ;;  %v3444_v46 = vsub.f32 %v4505_v61, %v1177_v12  ;;  %v3447_v44 = vsub.f32 %v4507_v50, %v876_v34  ;;  %v4510_v49 = vld [vmem:[#allocation6_spill] sm:$0xff] }
 0x1ec   : > { %4502 = vst [vmem:[#allocation68_spill] sm:$0xff] %v3438_v57  ;;  %v3449_v18 = vpop.eup %2287  ;;  %2307 = vpow2.f32 %v1265_v19  ;;  %1004 = vadd.xlane.f32.xlu0 %v1003_v36  ;;  %v3452_v62 = vsub.f32 %v4510_v49, %v876_v34  ;;  %v1307_v51 = vadd.f32 %v3433_v63, %v3428_v0  ;;  %v1304_v13 = vadd.f32 %v3407_v58, %v3402_v56  ;;  %v4515_v58 = vld [vmem:[#allocation5_spill] sm:$0xff] }
 0x1ed   : > { %4504 = vst [vmem:[#allocation2_spill] sm:$0xff] %v3441_v45  ;;  %4506 = vst [vmem:[#allocation3_spill] sm:$0xff] %v3444_v46  ;;  %v3458_v55 = vpop.eup %2289  ;;  %2309 = vpow2.f32 %v963_v30  ;;  %v1267_v61 = vmul.f32 1.442695, %v3441_v45  ;;  %v1269_v50 = vmul.f32 1.442695, %v3444_v46  ;;  %v879_v34 = vpop.xlane.xlu0 %878 }
 0x1ee   : > { %4508 = vst [vmem:[#allocation4_spill] sm:$0xff] %v3447_v44  ;;  %4509 = vst [vmem:[#allocation69_spill] sm:$0xff] %v3449_v18  ;;  %v967_v12 = vmul.f32 1.442695, %v3447_v44  ;;  %v3463_v19 = vpop.eup %2291  ;;  %2311 = vpow2.f32 %v965_v38  ;;  %v969_v49 = vmul.f32 1.442695, %v3452_v62  ;;  %1305 = vadd.xlane.f32.xlu1 %v1304_v13  ;;  %v1180_v36 = vpop.xlane.xlu1 %1179 }
 0x1ef   : > { %4511 = vst [vmem:[#allocation6_spill] sm:$0xff] %v3452_v62  ;;  %4512 = vst [vmem:[#allocation70_spill] sm:$0xff] %v3458_v55  ;;  %v3466_v63 = vpop.eup %2293  ;;  %2313 = vpow2.f32 %v1267_v61  ;;  %v3469_v56 = vsub.f32 %v4515_v58, %v1180_v36  ;;  %v4517_v30 = vld [vmem:[#allocation7_spill] sm:$0xff]  ;;  %v4519_v46 = vld [vmem:[#allocation8_spill] sm:$0xff]  ;;  %v1006_v62 = vadd.f32 %v3449_v18, %v3438_v57 }
 0x1f0   : > { %4513 = vst [vmem:[#allocation71_spill] sm:$0xff] %v3463_v19  ;;  %4514 = vst [vmem:[#allocation72_spill] sm:$0xff] %v3466_v63  ;;  %v3472_v0 = vsub.f32 %v4517_v30, %v1180_v36  ;;  %v3475_v45 = vsub.f32 %v4519_v46, %v879_v34  ;;  %v3477_v44 = vpop.eup %2295  ;;  %2315 = vpow2.f32 %v1269_v50  ;;  %1308 = vadd.xlane.f32.xlu0 %v1307_v51  ;;  %v4522_v38 = vld [vmem:[#allocation10_spill] sm:$0xff] }
 0x1f1   : > { %4516 = vst [vmem:[#allocation5_spill] sm:$0xff] %v3469_v56  ;;  %4521 = vst [vmem:[#allocation73_spill] sm:$0xff] %v3477_v44  ;;  %v3480_v13 = vsub.f32 %v4522_v38, %v879_v34  ;;  %v3484_v61 = vpop.eup %2297  ;;  %2317 = vpow2.f32 %v967_v12  ;;  %v1271_v58 = vmul.f32 1.442695, %v3469_v56  ;;  %v1009_v50 = vadd.f32 %v3477_v44, %v3466_v63  ;;  %v1183_v34 = vpop.xlane.xlu0 %1182  ;;  %v4527_v12 = vld [vmem:[#allocation9_spill] sm:$0xff]  ;;  %v4533_v44 = vld [vmem:[#allocation12_spill] sm:$0xff] }
 0x1f2   : > { %4518 = vst [vmem:[#allocation7_spill] sm:$0xff] %v3472_v0  ;;  %4520 = vst [vmem:[#allocation8_spill] sm:$0xff] %v3475_v45  ;;  %v1273_v36 = vmul.f32 1.442695, %v3472_v0  ;;  %v971_v46 = vmul.f32 1.442695, %v3475_v45  ;;  %v3489_v30 = vpop.eup %2299  ;;  %2319 = vpow2.f32 %v969_v49  ;;  %1007 = vadd.xlane.f32.xlu1 %v1006_v62  ;;  %v882_v38 = vpop.xlane.xlu1 %881  ;;  %v3497_v56 = vsub.f32 %v4527_v12, %v1183_v34 }
 0x1f3   : > { %4523 = vst [vmem:[#allocation10_spill] sm:$0xff] %v3480_v13  ;;  %4524 = vst [vmem:[#allocation74_spill] sm:$0xff] %v3484_v61  ;;  %v973_v51 = vmul.f32 1.442695, %v3480_v13  ;;  %v3494_v18 = vpop.eup %2301  ;;  %2321 = vpow2.f32 %v1271_v58  ;;  %v4529_v0 = vld [vmem:[#allocation11_spill] sm:$0xff]  ;;  %v3503_v45 = vsub.f32 %v3122_v53, %v882_v38  ;;  %v3508_v62 = vsub.f32 %v4533_v44, %v882_v38 }
 0x1f4   : > { %4525 = vst [vmem:[#allocation75_spill] sm:$0xff] %v3489_v30  ;;  %4526 = vst [vmem:[#allocation76_spill] sm:$0xff] %v3494_v18  ;;  %v3500_v57 = vsub.f32 %v4529_v0, %v1183_v34  ;;  %v3505_v49 = vpop.eup %2303  ;;  %2323 = vpow2.f32 %v1273_v36  ;;  %1010 = vadd.xlane.f32.xlu0 %v1009_v50  ;;  %v1313_v63 = vadd.f32 %v3489_v30, %v3484_v61  ;;  %v1275_v0 = vmul.f32 1.442695, %v3497_v56 }
 0x1f5   : > { %4528 = vst [vmem:[#allocation9_spill] sm:$0xff] %v3497_v56  ;;  %4531 = vst [vmem:[#allocation77_spill] sm:$0xff] %v3503_v45  ;;  %v1310_v58 = vadd.f32 %v3463_v19, %v3458_v55  ;;  %v3514_v12 = vpop.eup %2305  ;;  %2325 = vpow2.f32 %v971_v46  ;;  %v975_v36 = vmul.f32 1.442695, %v3503_v45  ;;  %v977_v38 = vmul.f32 1.442695, %v3508_v62 }
 0x1f6   : > { %4530 = vst [vmem:[#allocation11_spill] sm:$0xff] %v3500_v57  ;;  %4532 = vst [vmem:[#allocation78_spill] sm:$0xff] %v3505_v49  ;;  %v1277_v53 = vmul.f32 1.442695, %v3500_v57  ;;  %v3518_v34 = vpop.eup %2307  ;;  %2327 = vpow2.f32 %v973_v51  ;;  %v1186_v44 = vpop.xlane.xlu1 %1185  ;;  %v1012_v51 = vadd.f32 %v3505_v49, %v3494_v18 }
 0x1f7   : > { %4534 = vst [vmem:[#allocation12_spill] sm:$0xff] %v3508_v62  ;;  %4535 = vst [vmem:[#allocation79_spill] sm:$0xff] %v3514_v12  ;;  %1311 = vadd.xlane.f32.xlu1 %v1310_v58  ;;  %v3521_v50 = vpop.eup %2309  ;;  %2329 = vpow2.f32 %v1275_v0  ;;  %v3525_v19 = vsub.f32 %v3124_v42, %v1186_v44  ;;  %v3528_v46 = vsub.f32 %v3128_v54, %v1186_v44 }
 0x1f8   : > { %4536 = vst [vmem:[#allocation80_spill] sm:$0xff] %v3518_v34  ;;  %4537 = vst [vmem:[#allocation81_spill] sm:$0xff] %v3521_v50  ;;  %v3530_v55 = vpop.eup %2311  ;;  %2331 = vpow2.f32 %v1277_v53  ;;  %1314 = vadd.xlane.f32.xlu0 %v1313_v63  ;;  %v1316_v62 = vadd.f32 %v3518_v34, %v3514_v12 }
 0x1f9   : > { %4538 = vst [vmem:[#allocation82_spill] sm:$0xff] %v3525_v19  ;;  %4539 = vst [vmem:[#allocation83_spill] sm:$0xff] %v3528_v46  ;;  %v3534_v58 = vpop.eup %2313  ;;  %v1015_v0 = vadd.f32 %v3530_v55, %v3521_v50  ;;  %2333 = vpow2.f32 %v975_v36  ;;  %v1279_v42 = vmul.f32 1.442695, %v3525_v19  ;;  %v1281_v53 = vmul.f32 1.442695, %v3528_v46 }
 0x1fa   : > { %4540 = vst [vmem:[#allocation84_spill] sm:$0xff] %v3530_v55  ;;  %4541 = vst [vmem:[#allocation85_spill] sm:$0xff] %v3534_v58  ;;  %v3538_v45 = vpop.eup %2315  ;;  %2335 = vpow2.f32 %v977_v38 }
 0x1fb   : > { %4542 = vst [vmem:[#allocation86_spill] sm:$0xff] %v3538_v45  ;;  %1013 = vadd.xlane.f32.xlu1 %v1012_v51  ;;  %v3541_v54 = vpop.eup %2317  ;;  %v1319_v44 = vadd.f32 %v3538_v45, %v3534_v58  ;;  %2337 = vpow2.f32 %v1279_v42 }
 0x1fc   : > { %4543 = vst [vmem:[#allocation87_spill] sm:$0xff] %v3541_v54  ;;  %v3544_v63 = vpop.eup %2319  ;;  %1016 = vadd.xlane.f32.xlu0 %v1015_v0  ;;  %2339 = vpow2.f32 %v1281_v53 }
 0x1fd   : > { %4544 = vst [vmem:[#allocation88_spill] sm:$0xff] %v3544_v63  ;;  %v3550_v49 = vpop.eup %2321  ;;  %v1018_v0 = vadd.f32 %v3544_v63, %v3541_v54 }
 0x1fe   : > { %4545 = vst [vmem:[#allocation89_spill] sm:$0xff] %v3550_v49  ;;  %v3552_v36 = vpop.eup %2323 }
 0x1ff   : > { %4546 = vst [vmem:[#allocation90_spill] sm:$0xff] %v3552_v36  ;;  %1317 = vadd.xlane.f32.xlu1 %v1316_v62  ;;  %v3554_v51 = vpop.eup %2325  ;;  %v1322_v42 = vadd.f32 %v3552_v36, %v3550_v49 }
 0x200   : > { %4547 = vst [vmem:[#allocation91_spill] sm:$0xff] %v3554_v51  ;;  %v3556_v38 = vpop.eup %2327  ;;  %1320 = vadd.xlane.f32.xlu0 %v1319_v44 }
 0x201   : > { %4548 = vst [vmem:[#allocation92_spill] sm:$0xff] %v3556_v38  ;;  %v3560_v46 = vpop.eup %2329  ;;  %v1021_v19 = vadd.f32 %v3556_v38, %v3554_v51 }
 0x202   : > { %4549 = vst [vmem:[#allocation93_spill] sm:$0xff] %v3560_v46  ;;  %v3564_v18 = vpop.eup %2331 }
 0x203   : > { %4550 = vst [vmem:[#allocation94_spill] sm:$0xff] %v3564_v18  ;;  %1019 = vadd.xlane.f32.xlu1 %v1018_v0  ;;  %v3566_v34 = vpop.eup %2333  ;;  %v1325_v62 = vadd.f32 %v3564_v18, %v3560_v46 }
 0x204   : > { %4551 = vst [vmem:[#allocation95_spill] sm:$0xff] %v3566_v34  ;;  %1022 = vadd.xlane.f32.xlu0 %v1021_v19  ;;  %v3572_v53 = vpop.eup %2335 }
 0x205   : > { %4552 = vst [vmem:[#allocation96_spill] sm:$0xff] %v3572_v53  ;;  %v3574_v44 = vpop.eup %2337  ;;  %v1024_v63 = vadd.f32 %v3572_v53, %v3566_v34 }
 0x206   : > { %4553 = vst [vmem:[#allocation97_spill] sm:$0xff] %v3574_v44  ;;  %v3578_v54 = vpop.eup %2339 }
 0x207   : > { %1323 = vadd.xlane.f32.xlu1 %v1322_v42  ;;  %4554 = vst [vmem:[#allocation98_spill] sm:$0xff] %v3578_v54  ;;  %v1328_v19 = vadd.f32 %v3578_v54, %v3574_v44 }
 0x208   : > { %1326 = vadd.xlane.f32.xlu0 %v1325_v62 }
 0x20b   : > { %1025 = vadd.xlane.f32.xlu1 %v1024_v63 }
 0x20f   : > { %1329 = vadd.xlane.f32.xlu1 %v1328_v19 }
 0x255   : > { %v981_v0 = vpop.xlane.xlu0 %980 }
 0x256   : > { %2341 = vlog2.f32 %v981_v0 }
 0x25c   : > { %v1285_v38 = vpop.xlane.xlu0 %1284 }
 0x25d   : > { %2343 = vrcp.f32 %v1285_v38 }
 0x25e   : > { %2345 = vlog2.f32 %v1285_v38  ;;  %v984_v36 = vpop.xlane.xlu1 %983 }
 0x25f   : > { %2347 = vrcp.f32 %v981_v0 }
 0x260   : > { %v987_v42 = vpop.xlane.xlu0 %986  ;;  %2349 = vlog2.f32 %v984_v36  ;;  %v2342_v53 = vpop.eup %2341 }
 0x261   : > { %2351 = vrcp.f32 %v984_v36  ;;  %v1076_v44 = vmul.f32 0.6931472, %v2342_v53 }
 0x262   : > { %v1288_v49 = vpop.xlane.xlu1 %1287  ;;  %2353 = vlog2.f32 %v987_v42 }
 0x263   : > { %v1107_v45 = vsub.f32 %v3135_v60, %v1076_v44 }
 0x264   : > { %v1291_v62 = vpop.xlane.xlu0 %1290 }
 0x265   : > { %2355 = vlog2.f32 %v1291_v62 }
 0x266   : > { %v990_v63 = vpop.xlane.xlu1 %989  ;;  %2357 = vrcp.f32 %v987_v42 }
 0x267   : > { %v2344_v34 = vpop.eup %2343  ;;  %2359 = vlog2.f32 %v1288_v49 }
 0x268   : > { %v2346_v54 = vpop.eup %2345  ;;  %v993_v19 = vpop.xlane.xlu0 %992  ;;  %2361 = vrcp.f32 %v1288_v49  ;;  %v1332_v18 = vmul.f32 %v2344_v34, %v3216_v37  ;;  %v1333_v36 = vmul.f32 %v2344_v34, %v3227_v22 }
 0x269   : > { %v2348_v51 = vpop.eup %2347  ;;  %v1380_v38 = vmul.f32 0.6931472, %v2346_v54  ;;  %2363 = vrcp.f32 %v1291_v62  ;;  %v4555_v54 = vld [vmem:[#allocation13_spill] sm:$0xff] }
 0x26a   : > { %v1294_v0 = vpop.xlane.xlu1 %1293  ;;  %2365 = vlog2.f32 %v990_v63  ;;  %v2350_v12 = vpop.eup %2349  ;;  %v1028_v42 = vmul.f32 %v2348_v51, %v3186_v25  ;;  %v1029_v53 = vmul.f32 %v2348_v51, %v3191_v6  ;;  %v1108_v62 = vsub.f32 %v4555_v54, %v1076_v44 }
 0x26b   : > { %2367 = vrcp.f32 %v990_v63  ;;  %v3587_v49 = vpop.eup %2351  ;;  %v1411_v55 = vsub.f32 %v3149_v47, %v1380_v38  ;;  %v1412_v60 = vsub.f32 %v3152_v1, %v1380_v38  ;;  %v3592_v50 = vmul.f32 0.6931472, %v2350_v12 }
 0x26c   : > { %v1297_v46 = vpop.xlane.xlu0 %1296  ;;  %2369 = vlog2.f32 %v993_v19  ;;  %v2354_v58 = vpop.eup %2353  ;;  %v1571_v22 = vadd.f32 %v1332_v18, %v1028_v42  ;;  %v1572_v34 = vadd.f32 %v1333_v36, %v1029_v53  ;;  %v1443_v30 = vmul.f32 %v1107_v45, %v1028_v42  ;;  %v4563_v45 = vld [vmem:[#allocation18_spill] sm:$0xff] }
 0x26d   : > { %2371 = vrcp.f32 %v993_v19  ;;  %v1080_v54 = vmul.f32 0.6931472, %v2354_v58  ;;  %v1444_v19 = vmul.f32 %v1108_v62, %v1029_v53  ;;  %v1475_v61 = vmul.f32 %v1411_v55, %v1332_v18 }
 0x26e   : > { %v996_v37 = vpop.xlane.xlu1 %995  ;;  %2373 = vlog2.f32 %v1294_v0  ;;  %v3596_v56 = vmul.f32 0.5, %v1571_v22  ;;  %v3598_v1 = vmul.f32 0.5, %v1572_v34  ;;  %v3602_v12 = vmul.f32 %v3587_v49, %v3232_v9 }
 0x26f   : > { %v2356_v63 = vpop.eup %2355  ;;  %2375 = vrcp.f32 %v1294_v0  ;;  %v1476_v58 = vmul.f32 %v1412_v60, %v1333_v36  ;;  %v1111_v9 = vsub.f32 %v3165_v5, %v1080_v54  ;;  %v1507_v36 = vadd.f32 %v1475_v61, %v1443_v30 }
 0x270   : > { %v999_v25 = vpop.xlane.xlu0 %998  ;;  %v2358_v6 = vpop.eup %2357  ;;  %v1384_v51 = vmul.f32 0.6931472, %v2356_v63  ;;  %2377 = vrcp.f32 %v1297_v46 }
 0x271   : > { %v2360_v44 = vpop.eup %2359  ;;  %2379 = vlog2.f32 %v1297_v46  ;;  %v1034_v18 = vmul.f32 %v2358_v6, %v3242_v8  ;;  %v1112_v8 = vsub.f32 %v3168_v31, %v1080_v54 }
 0x272   : > { %v1300_v47 = vpop.xlane.xlu1 %1299  ;;  %v3594_v57 = vpop.eup %2361  ;;  %2381 = vrcp.f32 %v996_v37  ;;  %v1415_v0 = vsub.f32 %v3175_v14, %v1384_v51  ;;  %v1416_v42 = vsub.f32 %v3178_v48, %v1384_v51  ;;  %v3609_v53 = vmul.f32 0.6931472, %v2360_v44 }
 0x273   : > { %v2364_v38 = vpop.eup %2363  ;;  %2383 = vlog2.f32 %v996_v37  ;;  %v1508_v51 = vadd.f32 %v1476_v58, %v1444_v19  ;;  %v1035_v44 = vmul.f32 %v2358_v6, %v3253_v26  ;;  %v1447_v26 = vmul.f32 %v1111_v9, %v1034_v18 }
 0x274   : > { %v1303_v46 = vpop.xlane.xlu0 %1302  ;;  %v2366_v55 = vpop.eup %2365  ;;  %2385 = vrcp.f32 %v999_v25  ;;  %v1338_v14 = vmul.f32 %v2364_v38, %v3260_v7  ;;  %v1339_v48 = vmul.f32 %v2364_v38, %v3265_v28  ;;  %v1413_v61 = vsub.f32 %v3143_v59, %v3609_v53  ;;  %v4556_v7 = vld [vmem:[#allocation14_spill] sm:$0xff] }
 0x275   : > { %v3611_v62 = vpop.eup %2367  ;;  %2387 = vlog2.f32 %v999_v25  ;;  %v3621_v60 = vmul.f32 0.6931472, %v2366_v55  ;;  %v1414_v28 = vsub.f32 %v4556_v7, %v3609_v53  ;;  %v3632_v55 = vmul.f32 0.5, %v1507_v36  ;;  %v4559_v36 = vld [vmem:[#allocation16_spill] sm:$0xff] }
 0x276   : > { %v1002_v37 = vpop.xlane.xlu1 %1001  ;;  %v2370_v34 = vpop.eup %2369  ;;  %2389 = vlog2.f32 %v1300_v47  ;;  %v1479_v31 = vmul.f32 %v1415_v0, %v1338_v14  ;;  %v1480_v30 = vmul.f32 %v1416_v42, %v1339_v48  ;;  %v1448_v6 = vmul.f32 %v1112_v8, %v1035_v44 }
 0x277   : > { %v3619_v63 = vpop.eup %2371  ;;  %2391 = vlog2.f32 %v1303_v46  ;;  %v3630_v38 = vmul.f32 0.6931472, %v2370_v34  ;;  %v1575_v58 = vadd.f32 %v1338_v14, %v1034_v18  ;;  %v3640_v34 = vmul.f32 0.5, %v1508_v51  ;;  %v4560_v14 = vld [vmem:[#allocation19_spill] sm:$0xff] }
 0x278   : > { %v2374_v25 = vpop.eup %2373  ;;  %2393 = vrcp.f32 %v1300_v47  ;;  %v4557_v47 = vld [vmem:[#allocation15_spill] sm:$0xff]  ;;  %v1512_v9 = vadd.f32 %v1480_v30, %v1448_v6  ;;  %v1032_v8 = vmul.f32 %v3587_v49, %v4566_v35  ;;  %v4570_v35 = vsub.f32 %v3162_v2, %v3592_v50 }
 0x279   : > { %v1005_v5 = vpop.xlane.xlu0 %1004  ;;  %v3626_v54 = vpop.eup %2375  ;;  %2395 = vlog2.f32 %v1002_v37  ;;  %v3638_v42 = vmul.f32 0.6931472, %v2374_v25  ;;  %v3654_v13 = vmul.f32 0.5, %v1575_v58 }
 0x27a   : > { %v3634_v19 = vpop.eup %2377  ;;  %2397 = vrcp.f32 %v1303_v46  ;;  %v1511_v46 = vadd.f32 %v1479_v31, %v1447_v26  ;;  %v1335_v31 = vmul.f32 %v3594_v57, %v3208_v41  ;;  %v4562_v26 = vld [vmem:[#allocation17_spill] sm:$0xff]  ;;  %v3666_v58 = vmul.f32 0.5, %v1512_v9 }
 0x27b   : > { %v2380_v59 = vpop.eup %2379  ;;  %2399 = vrcp.f32 %v1002_v37  ;;  %v1306_v53 = vpop.xlane.xlu1 %1305  ;;  %v1576_v37 = vadd.f32 %v1339_v48, %v1035_v44  ;;  %v4564_v48 = vld [vmem:[#allocation20_spill] sm:$0xff]  ;;  %v1446_v49 = vmul.f32 %v4570_v35, %v1032_v8 }
 0x27c   : > { %v3642_v7 = vpop.eup %2381  ;;  %2401 = vlog2.f32 %v1005_v5  ;;  %v3652_v51 = vmul.f32 0.6931472, %v2380_v59  ;;  %v1336_v44 = vmul.f32 %v3594_v57, %v4564_v48  ;;  %v3664_v25 = vmul.f32 0.5, %v1511_v46  ;;  %v4568_v57 = vld [vmem:[#allocation21_spill] sm:$0xff] }
 0x27d   : > { %v1309_v22 = vpop.xlane.xlu0 %1308  ;;  %4558 = vst [vmem:[#allocation13_spill] sm:$0xff] %v3642_v7  ;;  %v2384_v18 = vpop.eup %2383  ;;  %2403 = vrcp.f32 %v1005_v5  ;;  %v1477_v7 = vmul.f32 %v1413_v61, %v1335_v31  ;;  %v3677_v46 = vmul.f32 0.5, %v1576_v37  ;;  %v4569_v61 = vsub.f32 %v3159_v10, %v3592_v50  ;;  %v4572_v37 = vld [vmem:[#allocation22_spill] sm:$0xff] }
 0x27e   : > { %v3650_v0 = vpop.eup %2385  ;;  %2405 = vrcp.f32 %v1306_v53  ;;  %v3668_v20 = vmul.f32 0.6931472, %v2384_v18  ;;  %v1419_v48 = vsub.f32 %v4568_v57, %v3652_v51  ;;  %v1420_v57 = vsub.f32 %v4572_v37, %v3652_v51 }
 0x27f   : > { %4561 = vst [vmem:[#allocation14_spill] sm:$0xff] %v3650_v0  ;;  %v2388_v30 = vpop.eup %2387  ;;  %2407 = vlog2.f32 %v1306_v53  ;;  %v1008_v6 = vpop.xlane.xlu1 %1007  ;;  %v1478_v53 = vmul.f32 %v1414_v28, %v1336_v44  ;;  %v1445_v9 = vmul.f32 %v4569_v61, %v3602_v12  ;;  %v1573_v51 = vadd.f32 %v1335_v31, %v3602_v12 }
 0x280   : > { %v2390_v59 = vpop.eup %2389  ;;  %2409 = vrcp.f32 %v1309_v22  ;;  %4565 = vst [vmem:[#allocation15_spill] sm:$0xff] %v3668_v20  ;;  %v3683_v18 = vmul.f32 0.6931472, %v2388_v30 }
 0x281   : > { %v1011_v5 = vpop.xlane.xlu0 %1010  ;;  %v2392_v41 = vpop.eup %2391  ;;  %2411 = vlog2.f32 %v1309_v22  ;;  %v3685_v27 = vmul.f32 0.6931472, %v2390_v59  ;;  %v1509_v10 = vadd.f32 %v1477_v7, %v1445_v9  ;;  %v1510_v50 = vadd.f32 %v1478_v53, %v1446_v49  ;;  %v4577_v7 = vld [vmem:[#allocation28_spill] sm:$0xff]  ;;  %v4578_v59 = vld [vmem:[#allocation29_spill] sm:$0xff]  ;;  %v4582_v9 = vld [vmem:[#allocation31_spill] sm:$0xff] }
 0x282   : > { %v3672_v0 = vpop.eup %2393  ;;  %2413 = vlog2.f32 %v3596_v56  ;;  %v3732_v20 = vmul.f32 0.5, %v1573_v51  ;;  %v1041_v51 = vmul.f32 %v3619_v63, %v3309_v23 }
 0x283   : > { %4567 = vst [vmem:[#allocation16_spill] sm:$0xff] %v3672_v0  ;;  %v2396_v22 = vpop.eup %2395  ;;  %2415 = vlog2.f32 %v3598_v1  ;;  %v3695_v0 = vmul.f32 0.6931472, %v2392_v41  ;;  %v1574_v41 = vadd.f32 %v1336_v44, %v1032_v8  ;;  %v3720_v31 = vmul.f32 0.5, %v1509_v10 }
 0x284   : > { %v3691_v28 = vpop.eup %2397  ;;  %2417 = vlog2.f32 %v1008_v6  ;;  %v1312_v53 = vpop.xlane.xlu1 %1311 }
 0x285   : > { %4571 = vst [vmem:[#allocation19_spill] sm:$0xff] %v3691_v28  ;;  %v3697_v61 = vpop.eup %2399  ;;  %2419 = vrcp.f32 %v1008_v6  ;;  %v1315_v2 = vpop.xlane.xlu0 %1314  ;;  %v3703_v28 = vmul.f32 0.6931472, %v2396_v22  ;;  %v3734_v8 = vmul.f32 0.5, %v1574_v41  ;;  %v1345_v41 = vmul.f32 %v3634_v19, %v3321_v4 }
 0x286   : > { %4573 = vst [vmem:[#allocation17_spill] sm:$0xff] %v3697_v61  ;;  %v2402_v35 = vpop.eup %2401  ;;  %2421 = vlog2.f32 %v1011_v5 }
 0x287   : > { %4576 = vst [vmem:[#allocation18_spill] sm:$0xff] %v3703_v28  ;;  %v3706_v37 = vpop.eup %2403  ;;  %2423 = vrcp.f32 %v1011_v5  ;;  %v3724_v32 = vmul.f32 0.6931472, %v2402_v35  ;;  %v3726_v5 = vmul.f32 0.5, %v1510_v50  ;;  %v1344_v50 = vmul.f32 %v3634_v19, %v3316_v40 }
 0x288   : > { %v3714_v49 = vpop.eup %2405  ;;  %2425 = vrcp.f32 %v1315_v2  ;;  %v1484_v12 = vmul.f32 %v1420_v57, %v1345_v41  ;;  %v4587_v19 = vsub.f32 %v3201_v3, %v3630_v38 }
 0x289   : > { %4580 = vst [vmem:[#allocation20_spill] sm:$0xff] %v3714_v49  ;;  %v2408_v44 = vpop.eup %2407  ;;  %4583 = vst [vmem:[#allocation25_spill] sm:$0xff] %v3724_v32  ;;  %2427 = vlog2.f32 %v1315_v2  ;;  %v1040_v2 = vmul.f32 %v3619_v63, %v3298_v24  ;;  %v1017_v22 = vpop.xlane.xlu0 %1016  ;;  %v1483_v40 = vmul.f32 %v1419_v48, %v1344_v50 }
 0x28a   : > { %v3728_v6 = vpop.eup %2409  ;;  %2429 = vrcp.f32 %v1312_v53  ;;  %v3742_v61 = vmul.f32 0.6931472, %v2408_v44 }
 0x28b   : > { %v2412_v10 = vpop.eup %2411  ;;  %2431 = vlog2.f32 %v1312_v53  ;;  %v1451_v48 = vmul.f32 %v4587_v19, %v1040_v2  ;;  %v4588_v53 = vld [vmem:[#allocation37_spill] sm:$0xff] }
 0x28c   : > { %v2414_v35 = vpop.eup %2413  ;;  %2433 = vlog2.f32 %v3654_v13  ;;  %v3757_v63 = vmul.f32 0.6931472, %v2412_v10  ;;  %v4590_v10 = vsub.f32 %v4560_v14, %v3630_v38 }
 0x28d   : > { %v2416_v30 = vpop.eup %2415  ;;  %v1636_v24 = vmul.f32 0.6931472, %v2414_v35  ;;  %2435 = vlog2.f32 %v3677_v46  ;;  %v1515_v19 = vadd.f32 %v1483_v40, %v1451_v48  ;;  %v1321_v44 = vpop.xlane.xlu0 %1320 }
 0x28e   : > { %v2418_v16 = vpop.eup %2417  ;;  %v1638_v49 = vmul.f32 0.6931472, %v2416_v30  ;;  %2437 = vlog2.f32 %v3732_v20 }
 0x28f   : > { %v3755_v23 = vpop.eup %2419  ;;  %v1699_v4 = vmul.f32 %v1636_v24, %v3596_v56  ;;  %2439 = vlog2.f32 %v3734_v8  ;;  %v1452_v56 = vmul.f32 %v4590_v10, %v1041_v51  ;;  %v3774_v32 = vmul.f32 0.6931472, %v2418_v16 }
 0x290   : > { %4586 = vst [vmem:[#allocation21_spill] sm:$0xff] %v3755_v23  ;;  %v2422_v35 = vpop.eup %2421  ;;  %v1700_v57 = vmul.f32 %v1638_v49, %v3598_v1  ;;  %v1014_v23 = vpop.xlane.xlu1 %1013  ;;  %2441 = vrcp.f32 %v1017_v22  ;;  %v1579_v49 = vadd.f32 %v1344_v50, %v1040_v2  ;;  %v1580_v16 = vadd.f32 %v1345_v41, %v1041_v51  ;;  %v4593_v2 = vld [vmem:[#allocation42_spill] sm:$0xff] }
 0x291   : > { %v3772_v24 = vpop.eup %2423  ;;  %4591 = vst [vmem:[#allocation22_spill] sm:$0xff] %v3774_v32  ;;  %v1731_v3 = vsub.f32 %v3632_v55, %v1699_v4  ;;  %2443 = vlog2.f32 %v1017_v22  ;;  %v1516_v1 = vadd.f32 %v1484_v12, %v1452_v56  ;;  %v3782_v14 = vmul.f32 0.6931472, %v2422_v35  ;;  %v4596_v32 = vld [vmem:[#allocation33_spill] sm:$0xff] }
 0x292   : > { %v3777_v15 = vpop.eup %2425  ;;  %v1732_v28 = vsub.f32 %v3640_v34, %v1700_v57  ;;  %2445 = vlog2.f32 %v1014_v23  ;;  %v4592_v34 = vld [vmem:[#allocation35_spill] sm:$0xff]  ;;  %v3794_v48 = vmul.f32 0.5, %v1515_v19  ;;  %v4594_v57 = vld [vmem:[#allocation30_spill] sm:$0xff]  ;;  %v3806_v50 = vmul.f32 0.5, %v1580_v16  ;;  %v4595_v19 = vld [vmem:[#allocation36_spill] sm:$0xff] }
 0x293   : > { %v2428_v30 = vpop.eup %2427  ;;  %2447 = vrcp.f32 %v1014_v23  ;;  %v1341_v22 = vmul.f32 %v3626_v54, %v4592_v34  ;;  %v3800_v23 = vmul.f32 0.5, %v1579_v49  ;;  %v1037_v56 = vmul.f32 %v3611_v62, %v4594_v57 }
 0x294   : > { %v3784_v10 = vpop.eup %2429  ;;  %v1763_v40 = vadd.f32 %v1732_v28, %v1731_v3  ;;  %2449 = vlog2.f32 %v1321_v44  ;;  %v3796_v41 = vmul.f32 0.6931472, %v2428_v30  ;;  %v1318_v35 = vpop.xlane.xlu1 %1317  ;;  %v3798_v28 = vmul.f32 0.5, %v1516_v1 }
 0x295   : > { %v2432_v12 = vpop.eup %2431  ;;  %2451 = vrcp.f32 %v1321_v44  ;;  %v1577_v49 = vadd.f32 %v1341_v22, %v1037_v56 }
 0x296   : > { %v2434_v51 = vpop.eup %2433  ;;  %1764 = vadd.xlane.f32.xlu0 %v1763_v40  ;;  %v1342_v40 = vmul.f32 %v3626_v54, %v4595_v19  ;;  %2453 = vlog2.f32 %v1318_v35 }
 0x297   : > { %v2436_v3 = vpop.eup %2435  ;;  %v1644_v4 = vmul.f32 0.6931472, %v2434_v51  ;;  %v1038_v51 = vmul.f32 %v3611_v62, %v4596_v32  ;;  %2455 = vlog2.f32 %v3800_v23  ;;  %v3824_v32 = vmul.f32 0.6931472, %v2432_v12 }
 0x298   : > { %v2438_v30 = vpop.eup %2437  ;;  %v1646_v55 = vmul.f32 0.6931472, %v2436_v3  ;;  %2457 = vlog2.f32 %v3806_v50 }
 0x299   : > { %v2440_v38 = vpop.eup %2439  ;;  %v1703_v57 = vmul.f32 %v1644_v4, %v3654_v13  ;;  %v1640_v39 = vmul.f32 0.6931472, %v2438_v30  ;;  %v1023_v13 = vpop.xlane.xlu0 %1022  ;;  %v1578_v4 = vadd.f32 %v1342_v40, %v1038_v51 }
 0x29a   : > { %v1704_v54 = vmul.f32 %v1646_v55, %v3677_v46  ;;  %v1642_v19 = vmul.f32 0.6931472, %v2440_v38  ;;  %v3819_v1 = vpop.eup %2441  ;;  %v3828_v38 = vmul.f32 0.5, %v1577_v49  ;;  %2459 = vlog2.f32 %v1023_v13 }
 0x29b   : > { %v1735_v44 = vsub.f32 %v3664_v25, %v1703_v57  ;;  %v1701_v3 = vmul.f32 %v1640_v39, %v3732_v20  ;;  %v2444_v30 = vpop.eup %2443  ;;  %v4597_v25 = vsub.f32 %v4562_v26, %v3638_v42  ;;  %v4598_v20 = vsub.f32 %v4563_v45, %v3638_v42  ;;  %v4603_v42 = vld [vmem:[#allocation51_spill] sm:$0xff] }
 0x29c   : > { %v1736_v62 = vsub.f32 %v3666_v58, %v1704_v54  ;;  %v1702_v46 = vmul.f32 %v1642_v19, %v3734_v8  ;;  %v2446_v55 = vpop.eup %2445  ;;  %v3837_v16 = vmul.f32 0.5, %v1578_v4  ;;  %v4600_v49 = vsub.f32 %v4557_v47, %v3621_v60 }
 0x29d   : > { %v1733_v34 = vsub.f32 %v3720_v31, %v1701_v3  ;;  %v1481_v39 = vmul.f32 %v4597_v25, %v1341_v22  ;;  %v1482_v57 = vmul.f32 %v4598_v20, %v1342_v40  ;;  %v3839_v12 = vpop.eup %2447  ;;  %v3845_v19 = vmul.f32 0.6931472, %v2444_v30  ;;  %v4604_v22 = vld [vmem:[#allocation19_spill] sm:$0xff]  ;;  %v4616_v25 = vld [vmem:[#allocation50_spill] sm:$0xff] }
 0x29e   : > { %4599 = vst [vmem:[#allocation28_spill] sm:$0xff] %v3839_v12  ;;  %v1769_v58 = vadd.f32 %v1736_v62, %v1735_v44  ;;  %v1734_v8 = vsub.f32 %v3726_v5, %v1702_v46  ;;  %v1449_v31 = vmul.f32 %v4600_v49, %v1037_v56  ;;  %v2450_v54 = vpop.eup %2449  ;;  %v4602_v26 = vsub.f32 %v4559_v36, %v3621_v60  ;;  %v4605_v44 = vld [vmem:[#allocation54_spill] sm:$0xff]  ;;  %v1020_v56 = vpop.xlane.xlu1 %1019  ;;  %v4607_v60 = vld [vmem:[#allocation47_spill] sm:$0xff]  ;;  %v4609_v46 = vld [vmem:[#allocation48_spill] sm:$0xff] }
 0x29f   : > { %4601 = vst [vmem:[#allocation29_spill] sm:$0xff] %v3845_v19  ;;  %2461 = vlog2.f32 %v3828_v38  ;;  %v1350_v40 = vmul.f32 %v4604_v22, %v4603_v42  ;;  %v3855_v3 = vmul.f32 0.6931472, %v2446_v55  ;;  %v4608_v36 = vld [vmem:[#allocation14_spill] sm:$0xff]  ;;  %v3860_v62 = vpop.eup %2451 }
 0x2a0   : > { %v1450_v45 = vmul.f32 %v4602_v26, %v1038_v51  ;;  %1770 = vadd.xlane.f32.xlu0 %v1769_v58  ;;  %v1766_v47 = vadd.f32 %v1734_v8, %v1733_v34  ;;  %2463 = vlog2.f32 %v3837_v16  ;;  %v1513_v4 = vadd.f32 %v1481_v39, %v1449_v31  ;;  %v4611_v34 = vld [vmem:[#allocation52_spill] sm:$0xff]  ;;  %v2454_v8 = vpop.eup %2453  ;;  %v1327_v26 = vpop.xlane.xlu0 %1326  ;;  %v4620_v31 = vld [vmem:[#allocation46_spill] sm:$0xff] }
 0x2a1   : > { %4606 = vst [vmem:[#allocation26_spill] sm:$0xff] %v3855_v3  ;;  %2465 = vrcp.f32 %v1318_v35  ;;  %v1046_v51 = vmul.f32 %v4608_v36, %v4607_v60  ;;  %v3866_v58 = vmul.f32 0.6931472, %v2450_v54  ;;  %v1351_v35 = vmul.f32 %v4604_v22, %v4611_v34  ;;  %v2456_v42 = vpop.eup %2455 }
 0x2a2   : > { %v1514_v30 = vadd.f32 %v1482_v57, %v1450_v45  ;;  %1767 = vadd.xlane.f32.xlu1 %v1766_v47  ;;  %2467 = vrcp.f32 %v1023_v13  ;;  %v1047_v22 = vmul.f32 %v4608_v36, %v4616_v25  ;;  %v2458_v34 = vpop.eup %2457  ;;  %v1652_v57 = vmul.f32 0.6931472, %v2456_v42 }
 0x2a3   : > { %v1583_v45 = vadd.f32 %v1350_v40, %v1046_v51  ;;  %2469 = vlog2.f32 %v1020_v56  ;;  %v1545_v5 = vmul.f32 0.5, %v1513_v4  ;;  %v1654_v49 = vmul.f32 0.6931472, %v2458_v34  ;;  %v4618_v4 = vld [vmem:[#allocation45_spill] sm:$0xff] }
 0x2a4   : > { %2471 = vrcp.f32 %v1020_v56  ;;  %v1546_v39 = vmul.f32 0.5, %v1514_v30  ;;  %v1584_v19 = vadd.f32 %v1351_v35, %v1047_v22  ;;  %v3882_v12 = vmul.f32 0.6931472, %v2454_v8  ;;  %v2460_v54 = vpop.eup %2459  ;;  %v1324_v56 = vpop.xlane.xlu1 %1323  ;;  %v4619_v30 = vld [vmem:[#allocation16_spill] sm:$0xff] }
 0x2a5   : > { %2473 = vrcp.f32 %v1327_v26  ;;  %v1707_v55 = vmul.f32 %v1652_v57, %v3800_v23  ;;  %v3885_v47 = vmul.f32 0.5, %v1583_v45  ;;  %v1708_v36 = vmul.f32 %v1654_v49, %v3806_v50  ;;  %v4621_v23 = vld [vmem:[#allocation41_spill] sm:$0xff]  ;;  %v4623_v45 = vld [vmem:[#allocation43_spill] sm:$0xff] }
 0x2a6   : > { %2475 = vlog2.f32 %v1327_v26  ;;  %v3888_v25 = vmul.f32 0.5, %v1584_v19  ;;  %v1347_v42 = vmul.f32 %v4619_v30, %v4618_v4  ;;  %v1348_v34 = vmul.f32 %v4619_v30, %v4620_v31  ;;  %v4622_v57 = vld [vmem:[#allocation13_spill] sm:$0xff] }
 0x2a7   : > { %v1739_v8 = vsub.f32 %v3794_v48, %v1707_v55  ;;  %2477 = vlog2.f32 %v3885_v47  ;;  %v1043_v26 = vmul.f32 %v4622_v57, %v4621_v23  ;;  %v1044_v50 = vmul.f32 %v4622_v57, %v4623_v45 }
 0x2a8   : > { %v1740_v19 = vsub.f32 %v3798_v28, %v1708_v36  ;;  %v4624_v4 = vsub.f32 %v3273_v11, %v3695_v0  ;;  %2479 = vlog2.f32 %v3888_v25  ;;  %v4625_v55 = vsub.f32 %v4577_v7, %v3683_v18 }
 0x2a9   : > { %v2462_v3 = vpop.eup %2461  ;;  %v1581_v23 = vadd.f32 %v1347_v42, %v1043_v26  ;;  %v1582_v20 = vadd.f32 %v1348_v34, %v1044_v50  ;;  %v3910_v57 = vmul.f32 0.6931472, %v2460_v54  ;;  %v4627_v11 = vsub.f32 %v4582_v9, %v3695_v0 }
 0x2aa   : > { %v2464_v49 = vpop.eup %2463  ;;  %v1648_v60 = vmul.f32 0.6931472, %v2462_v3  ;;  %v1487_v13 = vmul.f32 %v4624_v4, %v1350_v40  ;;  %v1455_v30 = vmul.f32 %v4625_v55, %v1046_v51  ;;  %v1775_v45 = vadd.f32 %v1740_v19, %v1739_v8  ;;  %v1026_v8 = vpop.xlane.xlu1 %1025  ;;  %v4631_v19 = vld [vmem:[#allocation61_spill] sm:$0xff] }
 0x2ab   : > { %v3905_v31 = vpop.eup %2465  ;;  %v1650_v48 = vmul.f32 0.6931472, %v2464_v49  ;;  %4626 = vst [vmem:[#allocation31_spill] sm:$0xff] %v3910_v57  ;;  %v1488_v40 = vmul.f32 %v4627_v11, %v1351_v35  ;;  %2481 = vrcp.f32 %v1324_v56  ;;  %v3919_v49 = vmul.f32 0.5, %v1581_v23  ;;  %v4630_v35 = vld [vmem:[#allocation3_spill] sm:$0xff] }
 0x2ac   : > { %v1705_v28 = vmul.f32 %v1648_v60, %v3828_v38  ;;  %v3916_v3 = vpop.eup %2467  ;;  %v3921_v7 = vmul.f32 0.5, %v1582_v20  ;;  %1776 = vadd.xlane.f32.xlu0 %v1775_v45  ;;  %2483 = vlog2.f32 %v1324_v56  ;;  %v4628_v38 = vsub.f32 %v4578_v59, %v3683_v18  ;;  %v4639_v56 = vld [vmem:[#allocation27_spill] sm:$0xff] }
 0x2ad   : > { %v1706_v36 = vmul.f32 %v1650_v48, %v3837_v16  ;;  %v2470_v51 = vpop.eup %2469  ;;  %v1519_v0 = vadd.f32 %v1487_v13, %v1455_v30  ;;  %2485 = vlog2.f32 %v3919_v49 }
 0x2ae   : > { %v1737_v54 = vsub.f32 %v1545_v5, %v1705_v28  ;;  %v1456_v60 = vmul.f32 %v4628_v38, %v1047_v22  ;;  %v3926_v9 = vpop.eup %2471  ;;  %v4632_v5 = vld [vmem:[#allocation62_spill] sm:$0xff]  ;;  %2487 = vlog2.f32 %v3921_v7  ;;  %v3942_v23 = vmul.f32 0.6931472, %v2470_v51  ;;  %v4636_v28 = vld [vmem:[#allocation60_spill] sm:$0xff] }
 0x2af   : > { %4629 = vst [vmem:[#allocation37_spill] sm:$0xff] %v3926_v9  ;;  %v1738_v20 = vsub.f32 %v1546_v39, %v1706_v36  ;;  %v3933_v48 = vpop.eup %2473  ;;  %2489 = vrcp.f32 %v1026_v8  ;;  %v1551_v45 = vmul.f32 0.5, %v1519_v0  ;;  %v1052_v11 = vmul.f32 %v3706_v37, %v4636_v28  ;;  %v4637_v36 = vld [vmem:[#allocation66_spill] sm:$0xff]  ;;  %v4642_v0 = vld [vmem:[#allocation67_spill] sm:$0xff] }
 0x2b0   : > { %v1520_v22 = vadd.f32 %v1488_v40, %v1456_v60  ;;  %v2476_v13 = vpop.eup %2475  ;;  %4635 = vst [vmem:[#allocation35_spill] sm:$0xff] %v3942_v23  ;;  %2491 = vlog2.f32 %v1026_v8  ;;  %v1356_v38 = vmul.f32 %v3728_v6, %v4637_v36  ;;  %v4638_v40 = vsub.f32 %v4579_v52, %v3685_v27  ;;  %v4643_v36 = vld [vmem:[#allocation23_spill] sm:$0xff] }
 0x2b1   : > { %v1772_v39 = vadd.f32 %v1738_v20, %v1737_v54  ;;  %v2478_v59 = vpop.eup %2477  ;;  %v4640_v51 = vsub.f32 %v4639_v56, %v3685_v27  ;;  %v4641_v54 = vld [vmem:[#allocation64_spill] sm:$0xff]  ;;  %v1357_v20 = vmul.f32 %v3728_v6, %v4642_v0  ;;  %v4644_v23 = vld [vmem:[#allocation15_spill] sm:$0xff]  ;;  %v3961_v52 = vmul.f32 0.6931472, %v2476_v13  ;;  %v4648_v6 = vld [vmem:[#allocation58_spill] sm:$0xff] }
 0x2b2   : > { %v1485_v60 = vmul.f32 %v4638_v40, %v1347_v42  ;;  %v1053_v8 = vmul.f32 %v3706_v37, %v4641_v54  ;;  %v2480_v28 = vpop.eup %2479  ;;  %v1552_v4 = vmul.f32 0.5, %v1520_v22  ;;  %v1660_v16 = vmul.f32 0.6931472, %v2478_v59  ;;  %v4646_v40 = vld [vmem:[#allocation24_spill] sm:$0xff]  ;;  %v4650_v54 = vld [vmem:[#allocation59_spill] sm:$0xff] }
 0x2b3   : > { %1773 = vadd.xlane.f32.xlu1 %v1772_v39  ;;  %v1486_v30 = vmul.f32 %v4640_v51, %v1348_v34  ;;  %v4645_v39 = vsub.f32 %v4643_v36, %v4644_v23  ;;  %v1587_v57 = vadd.f32 %v1356_v38, %v1052_v11  ;;  %v1662_v42 = vmul.f32 0.6931472, %v2480_v28  ;;  %v4649_v22 = vld [vmem:[#allocation20_spill] sm:$0xff] }
 0x2b4   : > { %v4647_v27 = vsub.f32 %v4646_v40, %v4644_v23  ;;  %v1588_v56 = vadd.f32 %v1357_v20, %v1053_v8  ;;  %v1711_v37 = vmul.f32 %v1660_v16, %v3885_v47  ;;  %v1353_v59 = vmul.f32 %v4649_v22, %v4648_v6  ;;  %v4651_v47 = vld [vmem:[#allocation53_spill] sm:$0xff]  ;;  %v4653_v40 = vld [vmem:[#allocation56_spill] sm:$0xff] }
 0x2b5   : > { %v1453_v55 = vmul.f32 %v4645_v39, %v1043_v26  ;;  %v3967_v51 = vmul.f32 0.5, %v1587_v57  ;;  %v1354_v0 = vmul.f32 %v4649_v22, %v4650_v54  ;;  %v3973_v26 = vpop.eup %2481  ;;  %v1712_v13 = vmul.f32 %v1662_v42, %v3888_v25  ;;  %v4652_v57 = vld [vmem:[#allocation17_spill] sm:$0xff] }
 0x2b6   : > { %v1454_v34 = vmul.f32 %v4647_v27, %v1044_v50  ;;  %v3976_v39 = vmul.f32 0.5, %v1588_v56  ;;  %v2484_v50 = vpop.eup %2483  ;;  %v1743_v23 = vsub.f32 %v1551_v45, %v1711_v37  ;;  %v1049_v16 = vmul.f32 %v4652_v57, %v4651_v47  ;;  %v4656_v45 = vld [vmem:[#allocation11_spill] sm:$0xff] }
 0x2b7   : > { %v1517_v28 = vadd.f32 %v1485_v60, %v1453_v55  ;;  %2493 = vlog2.f32 %v3967_v51  ;;  %v1050_v27 = vmul.f32 %v4652_v57, %v4653_v40  ;;  %v2486_v6 = vpop.eup %2485  ;;  %v1744_v18 = vsub.f32 %v1552_v4, %v1712_v13  ;;  %v4657_v4 = vld [vmem:[#allocation39_spill] sm:$0xff]  ;;  %v4658_v13 = vld [vmem:[#allocation25_spill] sm:$0xff] }
 0x2b8   : > { %v1518_v36 = vadd.f32 %v1486_v30, %v1454_v34  ;;  %v4655_v25 = vsub.f32 %v3329_v21, %v3757_v63  ;;  %2495 = vlog2.f32 %v3976_v39  ;;  %v2488_v30 = vpop.eup %2487  ;;  %v1656_v42 = vmul.f32 0.6931472, %v2486_v6 }
 0x2b9   : > { %v1585_v34 = vadd.f32 %v1353_v59, %v1049_v16  ;;  %v1586_v56 = vadd.f32 %v1354_v0, %v1050_v27  ;;  %v3991_v37 = vpop.eup %2489  ;;  %v3993_v47 = vmul.f32 0.6931472, %v2484_v50  ;;  %v1781_v57 = vadd.f32 %v1744_v18, %v1743_v23 }
 0x2ba   : > { %v1491_v55 = vmul.f32 %v4655_v25, %v1356_v38  ;;  %v1658_v40 = vmul.f32 0.6931472, %v2488_v30  ;;  %v4659_v54 = vsub.f32 %v4657_v4, %v4658_v13  ;;  %v3998_v38 = vpop.eup %2491  ;;  %v1549_v25 = vmul.f32 0.5, %v1517_v28 }
 0x2bb   : > { %v1709_v22 = vmul.f32 %v1656_v42, %v3919_v49  ;;  %v4001_v9 = vmul.f32 0.5, %v1585_v34  ;;  %v4003_v6 = vmul.f32 0.5, %v1586_v56  ;;  %1782 = vadd.xlane.f32.xlu0 %v1781_v57  ;;  %v1550_v60 = vmul.f32 0.5, %v1518_v36  ;;  %v4663_v34 = vld [vmem:[#allocation40_spill] sm:$0xff] }
 0x2bc   : > { %v1459_v21 = vmul.f32 %v4659_v54, %v1052_v11  ;;  %v1710_v50 = vmul.f32 %v1658_v40, %v3921_v7  ;;  %v4660_v18 = vsub.f32 %v3332_v29, %v3757_v63  ;;  %v4009_v11 = vpop.xlane.xlu1 %1329  ;;  %v4661_v28 = vsub.f32 %v4588_v53, %v3742_v61  ;;  %v4662_v54 = vld [vmem:[#allocation74_spill] sm:$0xff]  ;;  %v4665_v29 = vld [vmem:[#allocation72_spill] sm:$0xff] }
 0x2bd   : > { %v1741_v4 = vsub.f32 %v1549_v25, %v1709_v22  ;;  %2497 = vlog2.f32 %v4001_v9  ;;  %v1362_v42 = vmul.f32 %v3777_v15, %v4662_v54  ;;  %v4664_v7 = vsub.f32 %v4663_v34, %v4658_v13  ;;  %v4667_v22 = vld [vmem:[#allocation18_spill] sm:$0xff]  ;;  %v4672_v25 = vld [vmem:[#allocation75_spill] sm:$0xff] }
 0x2be   : > { %v1492_v23 = vmul.f32 %v4660_v18, %v1357_v20  ;;  %v1523_v30 = vadd.f32 %v1491_v55, %v1459_v21  ;;  %v1489_v49 = vmul.f32 %v4661_v28, %v1353_v59  ;;  %v1742_v36 = vsub.f32 %v1550_v60, %v1710_v50  ;;  %v4666_v20 = vld [vmem:[#allocation32_spill] sm:$0xff]  ;;  %v4669_v59 = vld [vmem:[#allocation38_spill] sm:$0xff]  ;;  %v4671_v21 = vld [vmem:[#allocation73_spill] sm:$0xff] }
 0x2bf   : > { %v1460_v56 = vmul.f32 %v4664_v7, %v1053_v8  ;;  %2499 = vlog2.f32 %v4003_v6  ;;  %v1058_v63 = vmul.f32 %v3772_v24, %v4665_v29  ;;  %v4668_v55 = vsub.f32 %v4666_v20, %v4667_v22  ;;  %v4673_v34 = vld [vmem:[#allocation34_spill] sm:$0xff] }
 0x2c0   : > { %v4670_v57 = vsub.f32 %v4669_v59, %v3742_v61  ;;  %v1059_v60 = vmul.f32 %v3772_v24, %v4671_v21  ;;  %v1363_v13 = vmul.f32 %v3777_v15, %v4672_v25  ;;  %v1778_v8 = vadd.f32 %v1742_v36, %v1741_v4  ;;  %v4676_v4 = vld [vmem:[#allocation71_spill] sm:$0xff]  ;;  %v4679_v59 = vld [vmem:[#allocation21_spill] sm:$0xff] }
 0x2c1   : > { %v1457_v53 = vmul.f32 %v4668_v55, %v1049_v16  ;;  %2501 = vrcp.f32 %v4009_v11  ;;  %v1524_v50 = vadd.f32 %v1492_v23, %v1460_v56  ;;  %v1591_v18 = vadd.f32 %v1362_v42, %v1058_v63  ;;  %v2494_v28 = vpop.eup %2493  ;;  %v4675_v55 = vld [vmem:[#allocation70_spill] sm:$0xff]  ;;  %v4680_v21 = vld [vmem:[#allocation69_spill] sm:$0xff] }
 0x2c2   : > { %v1490_v40 = vmul.f32 %v4670_v57, %v1354_v0  ;;  %v1555_v54 = vmul.f32 0.5, %v1523_v30  ;;  %v4674_v16 = vsub.f32 %v4673_v34, %v4667_v22  ;;  %v1592_v61 = vadd.f32 %v1363_v13, %v1059_v60  ;;  %v2496_v0 = vpop.eup %2495  ;;  %1779 = vadd.xlane.f32.xlu1 %v1778_v8 }
 0x2c3   : > { %v1521_v29 = vadd.f32 %v1489_v49, %v1457_v53  ;;  %v1668_v20 = vmul.f32 0.6931472, %v2494_v28  ;;  %v4037_v24 = vmul.f32 0.5, %v1591_v18  ;;  %v1359_v15 = vmul.f32 %v3784_v10, %v4675_v55  ;;  %v4678_v53 = vld [vmem:[#allocation68_spill] sm:$0xff] }
 0x2c4   : > { %v1458_v7 = vmul.f32 %v4674_v16, %v1050_v27  ;;  %v1360_v23 = vmul.f32 %v3784_v10, %v4676_v4  ;;  %v1670_v36 = vmul.f32 0.6931472, %v2496_v0  ;;  %v4677_v30 = vsub.f32 %v3385_v43, %v3796_v41  ;;  %v4681_v10 = vld [vmem:[#allocation5_spill] sm:$0xff] }
 0x2c5   : > { %v4046_v27 = vmul.f32 0.5, %v1592_v61  ;;  %v1715_v49 = vmul.f32 %v1668_v20, %v3967_v51  ;;  %2503 = vlog2.f32 %v4037_v24  ;;  %v1055_v57 = vmul.f32 %v4679_v59, %v4678_v53  ;;  %v4685_v53 = vld [vmem:[#allocation85_spill] sm:$0xff] }
 0x2c6   : > { %v1522_v56 = vadd.f32 %v1490_v40, %v1458_v7  ;;  %v1495_v22 = vmul.f32 %v4677_v30, %v1362_v42  ;;  %v1056_v25 = vmul.f32 %v4679_v59, %v4680_v21  ;;  %v1437_v8 = vsub.f32 %v4681_v10, %v3993_v47 }
 0x2c7   : > { %v1556_v40 = vmul.f32 0.5, %v1524_v50  ;;  %v1716_v18 = vmul.f32 %v1670_v36, %v3976_v39  ;;  %2505 = vlog2.f32 %v4046_v27  ;;  %v1747_v43 = vsub.f32 %v1555_v54, %v1715_v49  ;;  %v2498_v16 = vpop.eup %2497 }
 0x2c8   : > { %v4682_v51 = vsub.f32 %v3363_v33, %v3782_v14  ;;  %v1589_v28 = vadd.f32 %v1359_v15, %v1055_v57  ;;  %v1590_v34 = vadd.f32 %v1360_v23, %v1056_v25  ;;  %v1553_v61 = vmul.f32 0.5, %v1521_v29 }
 0x2c9   : > { %v1748_v7 = vsub.f32 %v1556_v40, %v1716_v18  ;;  %v1554_v0 = vmul.f32 0.5, %v1522_v56  ;;  %v4683_v20 = vsub.f32 %v4605_v44, %v3796_v41  ;;  %v2500_v50 = vpop.eup %2499  ;;  %v1664_v4 = vmul.f32 0.6931472, %v2498_v16  ;;  %v4686_v44 = vld [vmem:[#allocation84_spill] sm:$0xff] }
 0x2ca   : > { %v1463_v42 = vmul.f32 %v4682_v51, %v1058_v63  ;;  %v4064_v36 = vmul.f32 0.5, %v1589_v28  ;;  %v4066_v54 = vmul.f32 0.5, %v1590_v34  ;;  %v1666_v33 = vmul.f32 0.6931472, %v2500_v50  ;;  %v4684_v63 = vld [vmem:[#allocation81_spill] sm:$0xff] }
 0x2cb   : > { %v1496_v55 = vmul.f32 %v4683_v20, %v1363_v13  ;;  %v1787_v30 = vadd.f32 %v1748_v7, %v1747_v43  ;;  %v1064_v49 = vmul.f32 %v3819_v1, %v4684_v63  ;;  %v1368_v29 = vmul.f32 %v3860_v62, %v4685_v53  ;;  %v4072_v56 = vpop.eup %2501 }
 0x2cc   : > { %v1527_v39 = vadd.f32 %v1495_v22, %v1463_v42  ;;  %v1713_v41 = vmul.f32 %v1664_v4, %v4001_v9  ;;  %2507 = vlog2.f32 %v4064_v36  ;;  %v1065_v13 = vmul.f32 %v3819_v1, %v4686_v44  ;;  %v4687_v22 = vld [vmem:[#allocation86_spill] sm:$0xff] }
 0x2cd   : > { %v1369_v59 = vmul.f32 %v3860_v62, %v4687_v22  ;;  %1788 = vadd.xlane.f32.xlu0 %v1787_v30  ;;  %v1714_v21 = vmul.f32 %v1666_v33, %v4003_v6  ;;  %v4688_v40 = vsub.f32 %v3368_v17, %v3782_v14  ;;  %v4689_v43 = vsub.f32 %v4609_v46, %v3824_v32  ;;  %v4690_v6 = vld [vmem:[#allocation22_spill] sm:$0xff]  ;;  %v4692_v14 = vld [vmem:[#allocation49_spill] sm:$0xff]  ;;  %v4696_v30 = vld [vmem:[#allocation76_spill] sm:$0xff] }
 0x2ce   : > { %2509 = vlog2.f32 %v4066_v54  ;;  %v1745_v9 = vsub.f32 %v1553_v61, %v1713_v41  ;;  %v1595_v1 = vadd.f32 %v1368_v29, %v1064_v49  ;;  %v1559_v34 = vmul.f32 0.5, %v1527_v39  ;;  %v4695_v39 = vld [vmem:[#allocation80_spill] sm:$0xff]  ;;  %v4698_v33 = vld [vmem:[#allocation78_spill] sm:$0xff] }
 0x2cf   : > { %v1464_v18 = vmul.f32 %v4688_v40, %v1059_v60  ;;  %v1493_v51 = vmul.f32 %v4689_v43, %v1359_v15  ;;  %2511 = vlog2.f32 %v4009_v11  ;;  %v1596_v42 = vadd.f32 %v1369_v59, %v1065_v13  ;;  %v2504_v17 = vpop.eup %2503  ;;  %v4694_v11 = vld [vmem:[#allocation79_spill] sm:$0xff]  ;;  %v4699_v41 = vld [vmem:[#allocation44_spill] sm:$0xff] }
 0x2d0   : > { %v1746_v28 = vsub.f32 %v1554_v0, %v1714_v21  ;;  %v4691_v16 = vsub.f32 %v4593_v2, %v4690_v6  ;;  %v4693_v60 = vsub.f32 %v4692_v14, %v3824_v32  ;;  %v4095_v15 = vmul.f32 0.5, %v1595_v1  ;;  %v4697_v32 = vld [vmem:[#allocation28_spill] sm:$0xff]  ;;  %v4701_v21 = vld [vmem:[#allocation2_spill] sm:$0xff] }
 0x2d1   : > { %v1528_v62 = vadd.f32 %v1496_v55, %v1464_v18  ;;  %v4097_v20 = vmul.f32 0.5, %v1596_v42  ;;  %v1365_v61 = vmul.f32 %v3905_v31, %v4694_v11  ;;  %v2506_v50 = vpop.eup %2505  ;;  %v1676_v55 = vmul.f32 0.6931472, %v2504_v17 }
 0x2d2   : > { %v1461_v7 = vmul.f32 %v4691_v16, %v1055_v57  ;;  %v1494_v46 = vmul.f32 %v4693_v60, %v1360_v23  ;;  %v1784_v0 = vadd.f32 %v1746_v28, %v1745_v9  ;;  %v1366_v2 = vmul.f32 %v3905_v31, %v4695_v39  ;;  %v4704_v16 = vld [vmem:[#allocation29_spill] sm:$0xff] }
 0x2d3   : > { %v1678_v57 = vmul.f32 0.6931472, %v2506_v50  ;;  %2513 = vlog2.f32 %v4095_v15  ;;  %v1061_v23 = vmul.f32 %v4697_v32, %v4696_v30  ;;  %v4108_v63 = vmul.f32 %v4697_v32, %v4698_v33  ;;  %v4712_v33 = vld [vmem:[#allocation92_spill] sm:$0xff] }
 0x2d4   : > { %v1525_v4 = vadd.f32 %v1493_v51, %v1461_v7  ;;  %1785 = vadd.xlane.f32.xlu1 %v1784_v0  ;;  %v1719_v53 = vmul.f32 %v1676_v55, %v4037_v24  ;;  %v4700_v44 = vsub.f32 %v4699_v41, %v4690_v6  ;;  %v4702_v31 = vsub.f32 %v4701_v21, %v3866_v58  ;;  %v4703_v24 = vld [vmem:[#allocation63_spill] sm:$0xff]  ;;  %v4708_v0 = vld [vmem:[#allocation94_spill] sm:$0xff] }
 0x2d5   : > { %2515 = vlog2.f32 %v4097_v20  ;;  %v1560_v18 = vmul.f32 0.5, %v1528_v62  ;;  %v1720_v43 = vmul.f32 %v1678_v57, %v4046_v27  ;;  %v1593_v51 = vadd.f32 %v1365_v61, %v1061_v23  ;;  %v4710_v57 = vld [vmem:[#allocation65_spill] sm:$0xff] }
 0x2d6   : > { %v1462_v22 = vmul.f32 %v4700_v44, %v1056_v25  ;;  %v1499_v40 = vmul.f32 %v4702_v31, %v1368_v29  ;;  %v1594_v9 = vadd.f32 %v1366_v2, %v4108_v63  ;;  %v1751_v1 = vsub.f32 %v1559_v34, %v1719_v53  ;;  %v2508_v25 = vpop.eup %2507  ;;  %v4707_v34 = vld [vmem:[#allocation93_spill] sm:$0xff] }
 0x2d7   : > { %v1557_v28 = vmul.f32 0.5, %v1525_v4  ;;  %v4705_v7 = vsub.f32 %v4703_v24, %v4704_v16  ;;  %v1752_v17 = vsub.f32 %v1560_v18, %v1720_v43  ;;  %v4706_v29 = vsub.f32 %v4630_v35, %v3866_v58  ;;  %v4709_v58 = vld [vmem:[#allocation91_spill] sm:$0xff] }
 0x2d8   : > { %v1526_v42 = vadd.f32 %v1494_v46, %v1462_v22  ;;  %v4126_v60 = vmul.f32 0.5, %v1593_v51  ;;  %v4128_v62 = vmul.f32 0.5, %v1594_v9  ;;  %v2510_v27 = vpop.eup %2509  ;;  %v1672_v11 = vmul.f32 0.6931472, %v2508_v25  ;;  %v4719_v25 = vld [vmem:[#allocation90_spill] sm:$0xff] }
 0x2d9   : > { %v1467_v6 = vmul.f32 %v4705_v7, %v1064_v49  ;;  %v1500_v14 = vmul.f32 %v4706_v29, %v1369_v59  ;;  %v1374_v46 = vmul.f32 %v3933_v48, %v4707_v34  ;;  %v1375_v55 = vmul.f32 %v3933_v48, %v4708_v0  ;;  %v2512_v49 = vpop.eup %2511  ;;  %v4722_v34 = vld [vmem:[#allocation37_spill] sm:$0xff] }
 0x2da   : > { %v1793_v4 = vadd.f32 %v1752_v17, %v1751_v1  ;;  %v1674_v39 = vmul.f32 0.6931472, %v2510_v27  ;;  %2517 = vlog2.f32 %v4126_v60  ;;  %v1070_v35 = vmul.f32 %v3916_v3, %v4709_v58  ;;  %v4715_v1 = vld [vmem:[#allocation55_spill] sm:$0xff] }
 0x2db   : > { %v1531_v50 = vadd.f32 %v1499_v40, %v1467_v6  ;;  %v1717_v59 = vmul.f32 %v1672_v11, %v4064_v36  ;;  %v4711_v30 = vsub.f32 %v4710_v57, %v4704_v16  ;;  %2519 = vlog2.f32 %v4128_v62  ;;  %v4714_v36 = vld [vmem:[#allocation7_spill] sm:$0xff] }
 0x2dc   : > { %v1071_v53 = vmul.f32 %v3916_v3, %v4712_v33  ;;  %1794 = vadd.xlane.f32.xlu0 %v1793_v4  ;;  %v1558_v48 = vmul.f32 0.5, %v1526_v42  ;;  %v1718_v41 = vmul.f32 %v1674_v39, %v4066_v54  ;;  %v4713_v44 = vsub.f32 %v4631_v19, %v3882_v12  ;;  %v4716_v3 = vld [vmem:[#allocation26_spill] sm:$0xff]  ;;  %v4723_v4 = vld [vmem:[#allocation88_spill] sm:$0xff] }
 0x2dd   : > { %v1468_v32 = vmul.f32 %v4711_v30, %v1065_v13  ;;  %v1599_v21 = vadd.f32 %v1374_v46, %v1070_v35  ;;  %v1438_v31 = vsub.f32 %v4714_v36, %v3993_v47  ;;  %v1749_v40 = vsub.f32 %v1557_v28, %v1717_v59  ;;  %v2514_v43 = vpop.eup %2513  ;;  %v4724_v59 = vld [vmem:[#allocation57_spill] sm:$0xff]  ;;  %v4744_v36 = vld [vmem:[#allocation12_spill] sm:$0xff] }
 0x2de   : > { %v1497_v22 = vmul.f32 %v4713_v44, %v1365_v61  ;;  %v1600_v13 = vadd.f32 %v1375_v55, %v1071_v53  ;;  %v1750_v51 = vsub.f32 %v1558_v48, %v1718_v41  ;;  %v1563_v9 = vmul.f32 0.5, %v1531_v50  ;;  %v4718_v61 = vld [vmem:[#allocation89_spill] sm:$0xff]  ;;  %v4721_v50 = vld [vmem:[#allocation87_spill] sm:$0xff] }
 0x2df   : > { %v1532_v18 = vadd.f32 %v1500_v14, %v1468_v32  ;;  %v4717_v24 = vsub.f32 %v4715_v1, %v4716_v3  ;;  %v4153_v16 = vmul.f32 0.5, %v1599_v21  ;;  %v2516_v54 = vpop.eup %2515  ;;  %v1684_v7 = vmul.f32 0.6931472, %v2514_v43  ;;  %v4726_v44 = vld [vmem:[#allocation9_spill] sm:$0xff] }
 0x2e0   : > { %v4155_v19 = vmul.f32 0.5, %v1600_v13  ;;  %v1371_v6 = vmul.f32 %v3973_v26, %v4718_v61  ;;  %v1372_v28 = vmul.f32 %v3973_v26, %v4719_v25  ;;  %v1790_v17 = vadd.f32 %v1750_v51, %v1749_v40 }
 0x2e1   : > { %v1465_v42 = vmul.f32 %v4717_v24, %v1061_v23  ;;  %v1686_v29 = vmul.f32 0.6931472, %v2516_v54  ;;  %v4720_v14 = vsub.f32 %v4632_v5, %v3882_v12  ;;  %v1723_v23 = vmul.f32 %v1684_v7, %v4095_v15  ;;  %v4732_v7 = vld [vmem:[#allocation98_spill] sm:$0xff] }
 0x2e2   : > { %2521 = vlog2.f32 %v4153_v16  ;;  %v1067_v0 = vmul.f32 %v4722_v34, %v4721_v50  ;;  %v1068_v39 = vmul.f32 %v4722_v34, %v4723_v4  ;;  %1791 = vadd.xlane.f32.xlu1 %v1790_v17  ;;  %v1564_v58 = vmul.f32 0.5, %v1532_v18  ;;  %v4738_v50 = vld [vmem:[#allocation35_spill] sm:$0xff]  ;;  %v4739_v34 = vld [vmem:[#allocation4_spill] sm:$0xff] }
 0x2e3   : > { %v1498_v27 = vmul.f32 %v4720_v14, %v1366_v2  ;;  %v1529_v11 = vadd.f32 %v1497_v22, %v1465_v42  ;;  %v1724_v26 = vmul.f32 %v1686_v29, %v4097_v20  ;;  %v4725_v12 = vsub.f32 %v4724_v59, %v4716_v3  ;;  %v4730_v3 = vld [vmem:[#allocation95_spill] sm:$0xff]  ;;  %v4733_v29 = vld [vmem:[#allocation8_spill] sm:$0xff] }
 0x2e4   : > { %2523 = vlog2.f32 %v4155_v19  ;;  %v4176_v15 = vmul.f32 0.6931472, %v2512_v49  ;;  %v1755_v2 = vsub.f32 %v1563_v9, %v1723_v23  ;;  %v1597_v57 = vadd.f32 %v1371_v6, %v1067_v0  ;;  %v2518_v32 = vpop.eup %2517  ;;  %v4734_v14 = vld [vmem:[#allocation31_spill] sm:$0xff] }
 0x2e5   : > { %v1466_v5 = vmul.f32 %v4725_v12, %v4108_v63  ;;  %v1598_v30 = vadd.f32 %v1372_v28, %v1068_v39  ;;  %v1756_v33 = vsub.f32 %v1564_v58, %v1724_v26  ;;  %v1561_v41 = vmul.f32 0.5, %v1529_v11  ;;  %v2520_v21 = vpop.eup %2519  ;;  %v4728_v63 = vld [vmem:[#allocation97_spill] sm:$0xff] }
 0x2e6   : > { %v4727_v22 = vsub.f32 %v4726_v44, %v3961_v52  ;;  %v1680_v40 = vmul.f32 0.6931472, %v2518_v32  ;;  %v1629_v18 = vmul.f32 0.5, %v1597_v57  ;;  %v1377_v49 = vmul.f32 %v4072_v56, %v4728_v63  ;;  %v4743_v63 = vld [vmem:[#allocation77_spill] sm:$0xff] }
 0x2e7   : > { %v1530_v48 = vadd.f32 %v1498_v27, %v1466_v5  ;;  %v4181_v13 = vmul.f32 0.5, %v1598_v30  ;;  %v1799_v43 = vadd.f32 %v1756_v33, %v1755_v2  ;;  %v1682_v51 = vmul.f32 0.6931472, %v2520_v21  ;;  %v4736_v27 = vld [vmem:[#allocation10_spill] sm:$0xff]  ;;  %v4742_v21 = vld [vmem:[#allocation83_spill] sm:$0xff] }
 0x2e8   : > { %v1503_v20 = vmul.f32 %v4727_v22, %v1374_v46  ;;  %v4729_v9 = vsub.f32 %v4656_v45, %v3961_v52  ;;  %v1073_v24 = vmul.f32 %v3991_v37, %v4730_v3  ;;  %v1721_v42 = vmul.f32 %v1680_v40, %v4126_v60  ;;  %v4731_v46 = vld [vmem:[#allocation96_spill] sm:$0xff]  ;;  %v4741_v33 = vld [vmem:[#allocation82_spill] sm:$0xff] }
 0x2e9   : > { %2525 = vlog2.f32 %v1629_v18  ;;  %v1074_v54 = vmul.f32 %v3991_v37, %v4731_v46  ;;  %v1378_v61 = vmul.f32 %v4072_v56, %v4732_v7  ;;  %1800 = vadd.xlane.f32.xlu0 %v1799_v43  ;;  %v1562_v25 = vmul.f32 0.5, %v1530_v48 }
 0x2ea   : > { %v1504_v1 = vmul.f32 %v4729_v9, %v1375_v55  ;;  %v1722_v17 = vmul.f32 %v1682_v51, %v4128_v62  ;;  %v4735_v52 = vsub.f32 %v4733_v29, %v4734_v14  ;;  %2527 = vlog2.f32 %v4181_v13  ;;  %v4740_v62 = vld [vmem:[#allocation6_spill] sm:$0xff] }
 0x2eb   : > { %v1753_v55 = vsub.f32 %v1561_v41, %v1721_v42  ;;  %v4737_v60 = vsub.f32 %v4736_v27, %v4734_v14  ;;  %v1601_v23 = vadd.f32 %v1377_v49, %v1073_v24  ;;  %v1602_v37 = vadd.f32 %v1378_v61, %v1074_v54 }
 0x2ec   : > { %v1471_v45 = vmul.f32 %v4735_v52, %v1070_v35  ;;  %v1133_v56 = vsub.f32 %v4739_v34, %v4738_v50  ;;  %v1754_v4 = vsub.f32 %v1562_v25, %v1722_v17  ;;  %v2522_v26 = vpop.eup %2521  ;;  %v1134_v59 = vsub.f32 %v4740_v62, %v4738_v50 }
 0x2ed   : > { %v1472_v11 = vmul.f32 %v4737_v60, %v1071_v53  ;;  %v1633_v35 = vmul.f32 0.5, %v1601_v23  ;;  %v1634_v5 = vmul.f32 0.5, %v1602_v37  ;;  %v1106_v57 = vmul.f32 0.6931472, %v3998_v38 }
 0x2ee   : > { %v1535_v58 = vadd.f32 %v1503_v20, %v1471_v45  ;;  %v2524_v2 = vpop.eup %2523  ;;  %v1796_v30 = vadd.f32 %v1754_v4, %v1753_v55  ;;  %v1692_v32 = vmul.f32 0.6931472, %v2522_v26  ;;  %v1501_v53 = vmul.f32 %v1437_v8, %v1371_v6 }
 0x2ef   : > { %v1536_v12 = vadd.f32 %v1504_v1, %v1472_v11  ;;  %v1441_v48 = vsub.f32 %v4741_v33, %v4176_v15  ;;  %v1694_v41 = vmul.f32 0.6931472, %v2524_v2  ;;  %v1502_v44 = vmul.f32 %v1438_v31, %v1372_v28 }
 0x2f0   : > { %2529 = vlog2.f32 %v1633_v35  ;;  %1797 = vadd.xlane.f32.xlu1 %v1796_v30  ;;  %v1567_v22 = vmul.f32 0.5, %v1535_v58  ;;  %v1727_v20 = vmul.f32 %v1692_v32, %v4153_v16  ;;  %v1469_v38 = vmul.f32 %v1133_v56, %v1067_v0 }
 0x2f1   : > { %2531 = vlog2.f32 %v1634_v5  ;;  %v1442_v40 = vsub.f32 %v4742_v21, %v4176_v15  ;;  %v1568_v10 = vmul.f32 0.5, %v1536_v12  ;;  %v1728_v8 = vmul.f32 %v1694_v41, %v4155_v19 }
 0x2f2   : > { %v1470_v6 = vmul.f32 %v1134_v59, %v1068_v39  ;;  %v1137_v43 = vsub.f32 %v4743_v63, %v1106_v57  ;;  %v1759_v51 = vsub.f32 %v1567_v22, %v1727_v20  ;;  %v1533_v9 = vadd.f32 %v1501_v53, %v1469_v38 }
 0x2f3   : > { %v2526_v47 = vpop.eup %2525  ;;  %v1138_v31 = vsub.f32 %v4744_v36, %v1106_v57  ;;  %v1760_v28 = vsub.f32 %v1568_v10, %v1728_v8  ;;  %v1505_v0 = vmul.f32 %v1441_v48, %v1377_v49  ;;  %v1506_v7 = vmul.f32 %v1442_v40, %v1378_v61 }
 0x2f4   : > { %v1534_v1 = vadd.f32 %v1502_v44, %v1470_v6  ;;  %v2528_v3 = vpop.eup %2527  ;;  %v1688_v16 = vmul.f32 0.6931472, %v2526_v47  ;;  %v1565_v15 = vmul.f32 0.5, %v1533_v9  ;;  %v1473_v17 = vmul.f32 %v1137_v43, %v1073_v24 }
 0x2f5   : > { %v1805_v42 = vadd.f32 %v1760_v28, %v1759_v51  ;;  %v1690_v46 = vmul.f32 0.6931472, %v2528_v3  ;;  %v1474_v29 = vmul.f32 %v1138_v31, %v1074_v54 }
 0x2f6   : > { %v1725_v25 = vmul.f32 %v1688_v16, %v1629_v18  ;;  %v1566_v19 = vmul.f32 0.5, %v1534_v1  ;;  %v1537_v52 = vadd.f32 %v1505_v0, %v1473_v17 }
 0x2f7   : > { %1806 = vadd.xlane.f32.xlu0 %v1805_v42  ;;  %v1726_v39 = vmul.f32 %v1690_v46, %v4181_v13  ;;  %v1538_v27 = vadd.f32 %v1506_v7, %v1474_v29 }
 0x2f8   : > { %v1757_v14 = vsub.f32 %v1565_v15, %v1725_v25  ;;  %v1569_v37 = vmul.f32 0.5, %v1537_v52 }
 0x2f9   : > { %v1758_v55 = vsub.f32 %v1566_v19, %v1726_v39  ;;  %v1570_v18 = vmul.f32 0.5, %v1538_v27 }
 0x2fa   : > { %v2530_v45 = vpop.eup %2529 }
 0x2fb   : > { %v2532_v60 = vpop.eup %2531  ;;  %v1696_v11 = vmul.f32 0.6931472, %v2530_v45  ;;  %v1802_v49 = vadd.f32 %v1758_v55, %v1757_v14 }
 0x2fc   : > { %v1698_v23 = vmul.f32 0.6931472, %v2532_v60 }
 0x2fd   : > { %v1729_v61 = vmul.f32 %v1696_v11, %v1633_v35  ;;  %1803 = vadd.xlane.f32.xlu1 %v1802_v49 }
 0x2fe   : > { %v1730_v24 = vmul.f32 %v1698_v23, %v1634_v5 }
 0x2ff   : > { %v1761_v50 = vsub.f32 %v1569_v37, %v1729_v61 }
 0x300   : > { %v1762_v34 = vsub.f32 %v1570_v18, %v1730_v24 }
 0x302   : > { %v1808_v56 = vadd.f32 %v1762_v34, %v1761_v50 }
 0x304   : > { %1809 = vadd.xlane.f32.xlu1 %v1808_v56 }
 0x323   : > { %v1765_v13 = vpop.xlane.xlu0 %1764 }
 0x324   : > { %1812 = vst.msk [vmem:[%s4228_s24] sm:$0xff] %vm1811_vm2, %v1765_v13 }
 0x32d   : > { %v1771_v54 = vpop.xlane.xlu0 %1770 }
 0x32e   : > { %1814 = vst.msk [vmem:[%s4228_s24 + $0x10] sm:$0xff] %vm1811_vm2, %v1771_v54 }
 0x32f   : > { %v1768_v4 = vpop.xlane.xlu1 %1767 }
 0x330   : > { %1813 = vst.msk [vmem:[%s4228_s24 + $0x8] sm:$0xff] %vm1811_vm2, %v1768_v4 }
 0x339   : > { %v1777_v58 = vpop.xlane.xlu0 %1776 }
 0x33a   : > { %1816 = vst.msk [vmem:[%s4228_s24 + $0x20] sm:$0xff] %vm1811_vm2, %v1777_v58 }
 0x340   : > { %v1774_v26 = vpop.xlane.xlu1 %1773 }
 0x341   : > { %1815 = vst.msk [vmem:[%s4228_s24 + $0x18] sm:$0xff] %vm1811_vm2, %v1774_v26 }
 0x348   : > { %v1783_v62 = vpop.xlane.xlu0 %1782 }
 0x349   : > { %1818 = vst.msk [vmem:[%s4228_s24 + $0x30] sm:$0xff] %vm1811_vm2, %v1783_v62 }
 0x34f   : > { %v1780_v59 = vpop.xlane.xlu1 %1779 }
 0x350   : > { %1817 = vst.msk [vmem:[%s4228_s24 + $0x28] sm:$0xff] %vm1811_vm2, %v1780_v59 }
 0x35a   : > { %v1789_v12 = vpop.xlane.xlu0 %1788 }
 0x35b   : > { %1820 = vst.msk [vmem:[%s4228_s24 + $0x40] sm:$0xff] %vm1811_vm2, %v1789_v12 }
 0x361   : > { %v1786_v35 = vpop.xlane.xlu1 %1785 }
 0x362   : > { %1819 = vst.msk [vmem:[%s4228_s24 + $0x38] sm:$0xff] %vm1811_vm2, %v1786_v35 }
 0x369   : > { %v1795_v5 = vpop.xlane.xlu0 %1794 }
 0x36a   : > { %1822 = vst.msk [vmem:[%s4228_s24 + $0x50] sm:$0xff] %vm1811_vm2, %v1795_v5 }
 0x36f   : > { %v1792_v2 = vpop.xlane.xlu1 %1791 }
 0x370   : > { %1821 = vst.msk [vmem:[%s4228_s24 + $0x48] sm:$0xff] %vm1811_vm2, %v1792_v2 }
 0x376   : > { %v1801_v57 = vpop.xlane.xlu0 %1800 }
 0x377   : > { %1824 = vst.msk [vmem:[%s4228_s24 + $0x60] sm:$0xff] %vm1811_vm2, %v1801_v57 }
 0x37d   : > { %v1798_v30 = vpop.xlane.xlu1 %1797 }
 0x37e   : > { %1823 = vst.msk [vmem:[%s4228_s24 + $0x58] sm:$0xff] %vm1811_vm2, %v1798_v30 }
 0x384   : > { %v1807_v32 = vpop.xlane.xlu0 %1806 }
 0x385   : > { %1826 = vst.msk [vmem:[%s4228_s24 + $0x70] sm:$0xff] %vm1811_vm2, %v1807_v32 }
 0x38a   : > { %v1804_v53 = vpop.xlane.xlu1 %1803 }
 0x38b   : > { %1825 = vst.msk [vmem:[%s4228_s24 + $0x68] sm:$0xff] %vm1811_vm2, %v1804_v53 }
 0x391   : > { %v1810_v33 = vpop.xlane.xlu1 %1809 }
 0x392   : > { %1827 = vst.msk [vmem:[%s4228_s24 + $0x78] sm:$0xff] %vm1811_vm2, %v1810_v33 }
 0x393 PF: > { %s12_s9 = sadd.s32 1, %s2539_s9  }
 0x394   : > { %p9_p4 = scmp.ge.s32.totalorder %s12_s9, 4  }
 0x396   :  { %11 = sbr.rel (!%p9_p4) target bundleno = 1 (0x1), region = 57 }

</bundles_post_ra>
